<compile_context>
chip_gen: v5e
topology: v5e:2x2
jax: 0.10.0
libtpu: 0.0.40
codegen_flags: <defaults>
</compile_context>

<pallas_src>
import jax
import jax.numpy as jnp
from jax.experimental import pallas as pl
from jax.experimental.pallas import tpu as pltpu


def _add_kernel(a_ref, b_ref, o_ref):
    # Whole-tile elementwise add on the VPU.
    o_ref[...] = a_ref[...] + b_ref[...]


# Per-array byte cap for the no-grid, single-full-block path.
_SINGLE_BLOCK_BYTES = 8 * 1024 * 1024
# Target bytes per *input block* in the 1-D grid path (amortizes the
# ~0.35 us per-grid-step pipeline overhead; >=2 MiB hits >=85% of HBM
# roofline in the measured f32-add sweep).
_GRID_BLOCK_TARGET_BYTES = 2 * 1024 * 1024
# Explicit scoped-VMEM request.  Worst cases:
#   single-block path: 3 arrays x 8 MiB = 24 MiB   (< 32 MiB)
#   grid path:         3 arrays x 2 bufs x 2 MiB = 12 MiB
# 32 MiB is within the raisable range on v5e/v6e (128 MiB physical) and v7x
# (64 MiB physical) while leaving headroom for compiler scratch.
_VMEM_LIMIT_BYTES = 32 * 1024 * 1024


def pallas_add(x303: jax.Array, x288: jax.Array) -> jax.Array:
    """Computes x303 + x288 (same shape/dtype) with a Pallas TPU kernel."""
    assert x303.shape == x288.shape and x303.dtype == x288.dtype
    orig_shape = x303.shape
    total = x303.size
    itemsize = x303.dtype.itemsize
    nbytes = total * itemsize

    if nbytes <= _SINGLE_BLOCK_BYTES:
        # Small case (the module's actual 138 KB shape): feed the ORIGINAL
        # arrays with full-array VMEM BlockSpecs.  No grid, no pipelining
        # machinery, no wrapper reshapes -> no hidden HBM relayout copies and
        # a single op launch.  This kernel is pure launch/DMA overhead, so
        # minimizing launches and HBM traffic is the whole game.
        return pl.pallas_call(
            _add_kernel,
            out_shape=jax.ShapeDtypeStruct(orig_shape, x303.dtype),
            in_specs=[
                pl.BlockSpec(memory_space=pltpu.MemorySpace.VMEM),
                pl.BlockSpec(memory_space=pltpu.MemorySpace.VMEM),
            ],
            out_specs=pl.BlockSpec(memory_space=pltpu.MemorySpace.VMEM),
            compiler_params=pltpu.CompilerParams(
                vmem_limit_bytes=_VMEM_LIMIT_BYTES,
            ),
        )(x303, x288)

    # --- Large-array fallback (not exercised by the module's shape) -------
    # Lane-dense flatten: keep sublanes as full as possible and push the rest
    # onto the fast 128-lane axis, then tile columns with ~2 MiB blocks.
    # NOTE: for large arrays the flatten may itself be a relayout copy; the
    # real fix for a standalone elementwise add is to fuse it into the
    # producer/consumer kernel.
    rows = next(r for r in (8, 4, 2, 1) if total % r == 0)
    cols = total // rows
    a2 = x303.reshape(rows, cols)
    b2 = x288.reshape(rows, cols)

    tile_cols = (_GRID_BLOCK_TARGET_BYTES // (rows * itemsize)) // 128 * 128
    tile_cols = max(tile_cols, 128)
    if tile_cols >= cols:
        tile_cols = cols  # full extent is always a legal block width
    grid = (pl.cdiv(cols, tile_cols),)

    out = pl.pallas_call(
        _add_kernel,
        out_shape=jax.ShapeDtypeStruct((rows, cols), x303.dtype),
        grid=grid,
        in_specs=[
            pl.BlockSpec((rows, tile_cols), lambda i: (0, i)),
            pl.BlockSpec((rows, tile_cols), lambda i: (0, i)),
        ],
        out_specs=pl.BlockSpec((rows, tile_cols), lambda i: (0, i)),
        compiler_params=pltpu.CompilerParams(
            dimension_semantics=("parallel",),
            vmem_limit_bytes=_VMEM_LIMIT_BYTES,
        ),
    )(a2, b2)
    return out.reshape(orig_shape)


if __name__ == "__main__":
    key = jax.random.PRNGKey(0)
    k1, k2 = jax.random.split(key)

    # Shape implied by the module's forward: [1, 176, 14, 14] float32.
    shape = (1, 176, 14, 14)
    x303 = jax.random.normal(k1, shape, dtype=jnp.float32)
    x288 = jax.random.normal(k2, shape, dtype=jnp.float32)

    y = pallas_add(x303, x288)
    jax.block_until_ready(y)

    # Correctness check against the reference (x303 + x288); exact in f32.
    ref = x303 + x288
    assert y.shape == ref.shape and y.dtype == ref.dtype
    assert jnp.allclose(y, ref, atol=0.0, rtol=0.0)

    print("KERNEL_OK")
</pallas_src>

<mosaic_0001>
module attributes {stable_mosaic.version = 11 : i64} {
  func.func @_add_kernel(%arg0: memref<1x176x14x14xf32, #tpu.memory_space<vmem>>, %arg1: memref<1x176x14x14xf32, #tpu.memory_space<vmem>>, %arg2: memref<1x176x14x14xf32, #tpu.memory_space<vmem>>) attributes {dimension_semantics = [], scalar_prefetch = 0 : i64, scratch_operands = 0 : i64, tpu.core_type = #tpu.core_type<tc>} {
    %c0 = arith.constant 0 : index
    %c0_0 = arith.constant 0 : index
    %c0_1 = arith.constant 0 : index
    %c0_2 = arith.constant 0 : index
    %0 = vector.load %arg0[%c0, %c0_0, %c0_1, %c0_2] : memref<1x176x14x14xf32, #tpu.memory_space<vmem>>, vector<1x176x14x14xf32>
    %c0_3 = arith.constant 0 : index
    %c0_4 = arith.constant 0 : index
    %c0_5 = arith.constant 0 : index
    %c0_6 = arith.constant 0 : index
    %1 = vector.load %arg1[%c0_3, %c0_4, %c0_5, %c0_6] : memref<1x176x14x14xf32, #tpu.memory_space<vmem>>, vector<1x176x14x14xf32>
    %2 = arith.addf %0, %1 : vector<1x176x14x14xf32>
    %c0_7 = arith.constant 0 : index
    %c0_8 = arith.constant 0 : index
    %c0_9 = arith.constant 0 : index
    %c0_10 = arith.constant 0 : index
    %3 = vector.load %arg2[%c0_7, %c0_8, %c0_9, %c0_10] : memref<1x176x14x14xf32, #tpu.memory_space<vmem>>, vector<1x176x14x14xf32>
    tpu.vector_store %arg2[%c0_7, %c0_8, %c0_9, %c0_10], %2 {strides = array<i32>} : memref<1x176x14x14xf32, #tpu.memory_space<vmem>>, vector<1x176x14x14xf32>,
    return
  }
}

</mosaic_0001>

<bundles_post_ra>
// kernel: tpu_custom_call.1
= control target key start
LH: loop header
LB: loop body
LE: loop exit
PB: predicated region body
PF: predicated region fallthrough
CT: control target
= control target key end

     0   :  { %vm1067_vm0 = vcmask 113664   ;;  %vm1069_vm1 = vcmask 111616   ;;  %s4960_s0 = inlined_call_operand.vmem [shape: f32[1,176,14,14], index: 0, kind: input, shape index: {}]   ;;  %s4961_s1 = inlined_call_operand.vmem [shape: f32[1,176,14,14], index: 1, kind: input, shape index: {}]   ;;  %s4962_s2 = inlined_call_operand.vmem [shape: f32[1,176,14,14], index: 2, kind: output, shape index: {}]  }
   0x1   :  { %v11_v0 = vld [vmem:[%s4960_s0] sm:$0xff]  ;;  %v12_v2 = vld [vmem:[%s4960_s0 + $0x8] sm:$0x3f]  ;;  %v13_v5 = vld [vmem:[%s4960_s0 + $0x10] sm:$0xff] }
   0x2   :  { %v363_v1 = vld [vmem:[%s4961_s1] sm:$0xff]  ;;  %v364_v4 = vld [vmem:[%s4961_s1 + $0x8] sm:$0x3f]  ;;  %v365_v6 = vld [vmem:[%s4961_s1 + $0x10] sm:$0xff] }
   0x3   :  { %v715_v3 = vadd.f32 %v363_v1, %v11_v0  ;;  %v716_v7 = vadd.f32 %v364_v4, %v12_v2  ;;  %v717_v8 = vadd.f32 %v365_v6, %v13_v5  ;;  %v14_v9 = vld [vmem:[%s4960_s0 + $0x18] sm:$0x3f]  ;;  %v15_v11 = vld [vmem:[%s4960_s0 + $0x20] sm:$0xff]  ;;  %v16_v14 = vld [vmem:[%s4960_s0 + $0x28] sm:$0x3f] }
   0x4   :  { %v366_v10 = vld [vmem:[%s4961_s1 + $0x18] sm:$0x3f]  ;;  %v367_v13 = vld [vmem:[%s4961_s1 + $0x20] sm:$0xff]  ;;  %v368_v15 = vld [vmem:[%s4961_s1 + $0x28] sm:$0x3f] }
   0x5   :  { %1068 = vst.msk [vmem:[%s4962_s2] sm:$0xff] %vm1067_vm0, %v715_v3  ;;  %v718_v12 = vadd.f32 %v366_v10, %v14_v9  ;;  %v719_v16 = vadd.f32 %v367_v13, %v15_v11  ;;  %v720_v17 = vadd.f32 %v368_v15, %v16_v14  ;;  %v17_v18 = vld [vmem:[%s4960_s0 + $0x30] sm:$0xff]  ;;  %v18_v20 = vld [vmem:[%s4960_s0 + $0x38] sm:$0x3f]  ;;  %v19_v23 = vld [vmem:[%s4960_s0 + $0x40] sm:$0xff] }
   0x6   :  { %1070 = vst.msk [vmem:[%s4962_s2 + $0x8] sm:$0x3f] %vm1069_vm1, %v716_v7  ;;  %v369_v19 = vld [vmem:[%s4961_s1 + $0x30] sm:$0xff]  ;;  %v370_v22 = vld [vmem:[%s4961_s1 + $0x38] sm:$0x3f]  ;;  %v371_v24 = vld [vmem:[%s4961_s1 + $0x40] sm:$0xff] }
   0x7   :  { %1071 = vst.msk [vmem:[%s4962_s2 + $0x10] sm:$0xff] %vm1067_vm0, %v717_v8  ;;  %v721_v21 = vadd.f32 %v369_v19, %v17_v18  ;;  %v722_v25 = vadd.f32 %v370_v22, %v18_v20  ;;  %v20_v26 = vld [vmem:[%s4960_s0 + $0x48] sm:$0x3f]  ;;  %v723_v28 = vadd.f32 %v371_v24, %v19_v23  ;;  %v21_v29 = vld [vmem:[%s4960_s0 + $0x50] sm:$0xff]  ;;  %v22_v31 = vld [vmem:[%s4960_s0 + $0x58] sm:$0x3f] }
   0x8   :  { %1072 = vst.msk [vmem:[%s4962_s2 + $0x18] sm:$0x3f] %vm1069_vm1, %v718_v12  ;;  %v372_v27 = vld [vmem:[%s4961_s1 + $0x48] sm:$0x3f]  ;;  %v373_v30 = vld [vmem:[%s4961_s1 + $0x50] sm:$0xff]  ;;  %v23_v34 = vld [vmem:[%s4960_s0 + $0x60] sm:$0xff] }
   0x9   :  { %1073 = vst.msk [vmem:[%s4962_s2 + $0x20] sm:$0xff] %vm1067_vm0, %v719_v16  ;;  %v724_v32 = vadd.f32 %v372_v27, %v20_v26  ;;  %v374_v33 = vld [vmem:[%s4961_s1 + $0x58] sm:$0x3f]  ;;  %v375_v35 = vld [vmem:[%s4961_s1 + $0x60] sm:$0xff]  ;;  %v725_v36 = vadd.f32 %v373_v30, %v21_v29  ;;  %v24_v37 = vld [vmem:[%s4960_s0 + $0x68] sm:$0x3f] }
   0xa   :  { %1074 = vst.msk [vmem:[%s4962_s2 + $0x28] sm:$0x3f] %vm1069_vm1, %v720_v17  ;;  %v376_v38 = vld [vmem:[%s4961_s1 + $0x68] sm:$0x3f]  ;;  %v726_v39 = vadd.f32 %v374_v33, %v22_v31  ;;  %v25_v40 = vld [vmem:[%s4960_s0 + $0x70] sm:$0xff]  ;;  %v727_v42 = vadd.f32 %v375_v35, %v23_v34  ;;  %v27_v46 = vld [vmem:[%s4960_s0 + $0x80] sm:$0xff] }
   0xb   :  { %1075 = vst.msk [vmem:[%s4962_s2 + $0x30] sm:$0xff] %vm1067_vm0, %v721_v21  ;;  %v377_v41 = vld [vmem:[%s4961_s1 + $0x70] sm:$0xff]  ;;  %v26_v43 = vld [vmem:[%s4960_s0 + $0x78] sm:$0x3f]  ;;  %v728_v45 = vadd.f32 %v376_v38, %v24_v37  ;;  %v379_v47 = vld [vmem:[%s4961_s1 + $0x80] sm:$0xff] }
   0xc   :  { %1076 = vst.msk [vmem:[%s4962_s2 + $0x38] sm:$0x3f] %vm1069_vm1, %v722_v25  ;;  %v378_v44 = vld [vmem:[%s4961_s1 + $0x78] sm:$0x3f]  ;;  %v729_v48 = vadd.f32 %v377_v41, %v25_v40  ;;  %v28_v49 = vld [vmem:[%s4960_s0 + $0x88] sm:$0x3f]  ;;  %v731_v54 = vadd.f32 %v379_v47, %v27_v46 }
   0xd   :  { %1077 = vst.msk [vmem:[%s4962_s2 + $0x40] sm:$0xff] %vm1067_vm0, %v723_v28  ;;  %v380_v50 = vld [vmem:[%s4961_s1 + $0x88] sm:$0x3f]  ;;  %v730_v51 = vadd.f32 %v378_v44, %v26_v43  ;;  %v29_v52 = vld [vmem:[%s4960_s0 + $0x90] sm:$0xff]  ;;  %v30_v55 = vld [vmem:[%s4960_s0 + $0x98] sm:$0x3f] }
   0xe   :  { %1078 = vst.msk [vmem:[%s4962_s2 + $0x48] sm:$0x3f] %vm1069_vm1, %v724_v32  ;;  %v381_v53 = vld [vmem:[%s4961_s1 + $0x90] sm:$0xff]  ;;  %v382_v56 = vld [vmem:[%s4961_s1 + $0x98] sm:$0x3f]  ;;  %v732_v57 = vadd.f32 %v380_v50, %v28_v49  ;;  %v31_v58 = vld [vmem:[%s4960_s0 + $0xa0] sm:$0xff] }
   0xf   :  { %1079 = vst.msk [vmem:[%s4962_s2 + $0x50] sm:$0xff] %vm1067_vm0, %v725_v36  ;;  %v383_v59 = vld [vmem:[%s4961_s1 + $0xa0] sm:$0xff]  ;;  %v733_v60 = vadd.f32 %v381_v53, %v29_v52  ;;  %v32_v61 = vld [vmem:[%s4960_s0 + $0xa8] sm:$0x3f]  ;;  %v734_v63 = vadd.f32 %v382_v56, %v30_v55  ;;  %v33_v0 = vld [vmem:[%s4960_s0 + $0xb0] sm:$0xff] }
  0x10   :  { %1080 = vst.msk [vmem:[%s4962_s2 + $0x58] sm:$0x3f] %vm1069_vm1, %v726_v39  ;;  %v384_v62 = vld [vmem:[%s4961_s1 + $0xa8] sm:$0x3f]  ;;  %v385_v1 = vld [vmem:[%s4961_s1 + $0xb0] sm:$0xff]  ;;  %v735_v2 = vadd.f32 %v383_v59, %v31_v58  ;;  %v35_v6 = vld [vmem:[%s4960_s0 + $0xc0] sm:$0xff] }
  0x11   :  { %1081 = vst.msk [vmem:[%s4962_s2 + $0x60] sm:$0xff] %vm1067_vm0, %v727_v42  ;;  %v34_v3 = vld [vmem:[%s4960_s0 + $0xb8] sm:$0x3f]  ;;  %v736_v5 = vadd.f32 %v384_v62, %v32_v61  ;;  %v387_v7 = vld [vmem:[%s4961_s1 + $0xc0] sm:$0xff]  ;;  %v737_v8 = vadd.f32 %v385_v1, %v33_v0  ;;  %v36_v9 = vld [vmem:[%s4960_s0 + $0xc8] sm:$0x3f] }
  0x12   :  { %1082 = vst.msk [vmem:[%s4962_s2 + $0x68] sm:$0x3f] %vm1069_vm1, %v728_v45  ;;  %v386_v4 = vld [vmem:[%s4961_s1 + $0xb8] sm:$0x3f]  ;;  %v388_v10 = vld [vmem:[%s4961_s1 + $0xc8] sm:$0x3f]  ;;  %v739_v14 = vadd.f32 %v387_v7, %v35_v6 }
  0x13   :  { %1083 = vst.msk [vmem:[%s4962_s2 + $0x70] sm:$0xff] %vm1067_vm0, %v729_v48  ;;  %v738_v11 = vadd.f32 %v386_v4, %v34_v3  ;;  %v37_v12 = vld [vmem:[%s4960_s0 + $0xd0] sm:$0xff]  ;;  %v38_v15 = vld [vmem:[%s4960_s0 + $0xd8] sm:$0x3f]  ;;  %v740_v17 = vadd.f32 %v388_v10, %v36_v9  ;;  %v39_v18 = vld [vmem:[%s4960_s0 + $0xe0] sm:$0xff] }
  0x14   :  { %1084 = vst.msk [vmem:[%s4962_s2 + $0x78] sm:$0x3f] %vm1069_vm1, %v730_v51  ;;  %v389_v13 = vld [vmem:[%s4961_s1 + $0xd0] sm:$0xff]  ;;  %v390_v16 = vld [vmem:[%s4961_s1 + $0xd8] sm:$0x3f]  ;;  %v391_v19 = vld [vmem:[%s4961_s1 + $0xe0] sm:$0xff] }
  0x15   :  { %1085 = vst.msk [vmem:[%s4962_s2 + $0x80] sm:$0xff] %vm1067_vm0, %v731_v54  ;;  %v741_v20 = vadd.f32 %v389_v13, %v37_v12  ;;  %v40_v21 = vld [vmem:[%s4960_s0 + $0xe8] sm:$0x3f]  ;;  %v742_v23 = vadd.f32 %v390_v16, %v38_v15  ;;  %v41_v24 = vld [vmem:[%s4960_s0 + $0xf0] sm:$0xff]  ;;  %v743_v26 = vadd.f32 %v391_v19, %v39_v18  ;;  %v42_v27 = vld [vmem:[%s4960_s0 + $0xf8] sm:$0x3f] }
  0x16   :  { %1086 = vst.msk [vmem:[%s4962_s2 + $0x88] sm:$0x3f] %vm1069_vm1, %v732_v57  ;;  %v392_v22 = vld [vmem:[%s4961_s1 + $0xe8] sm:$0x3f]  ;;  %v393_v25 = vld [vmem:[%s4961_s1 + $0xf0] sm:$0xff]  ;;  %v43_v30 = vld [vmem:[%s4960_s0 + $0x100] sm:$0xff] }
  0x17   :  { %1087 = vst.msk [vmem:[%s4962_s2 + $0x90] sm:$0xff] %vm1067_vm0, %v733_v60  ;;  %v394_v28 = vld [vmem:[%s4961_s1 + $0xf8] sm:$0x3f]  ;;  %v744_v29 = vadd.f32 %v392_v22, %v40_v21  ;;  %v395_v31 = vld [vmem:[%s4961_s1 + $0x100] sm:$0xff]  ;;  %v745_v32 = vadd.f32 %v393_v25, %v41_v24  ;;  %v44_v33 = vld [vmem:[%s4960_s0 + $0x108] sm:$0x3f] }
  0x18   :  { %1088 = vst.msk [vmem:[%s4962_s2 + $0x98] sm:$0x3f] %vm1069_vm1, %v734_v63  ;;  %v396_v34 = vld [vmem:[%s4961_s1 + $0x108] sm:$0x3f]  ;;  %v746_v35 = vadd.f32 %v394_v28, %v42_v27  ;;  %v45_v36 = vld [vmem:[%s4960_s0 + $0x110] sm:$0xff]  ;;  %v747_v38 = vadd.f32 %v395_v31, %v43_v30  ;;  %v47_v42 = vld [vmem:[%s4960_s0 + $0x120] sm:$0xff] }
  0x19   :  { %1089 = vst.msk [vmem:[%s4962_s2 + $0xa0] sm:$0xff] %vm1067_vm0, %v735_v2  ;;  %v397_v37 = vld [vmem:[%s4961_s1 + $0x110] sm:$0xff]  ;;  %v46_v39 = vld [vmem:[%s4960_s0 + $0x118] sm:$0x3f]  ;;  %v748_v41 = vadd.f32 %v396_v34, %v44_v33  ;;  %v399_v43 = vld [vmem:[%s4961_s1 + $0x120] sm:$0xff] }
  0x1a   :  { %1090 = vst.msk [vmem:[%s4962_s2 + $0xa8] sm:$0x3f] %vm1069_vm1, %v736_v5  ;;  %v398_v40 = vld [vmem:[%s4961_s1 + $0x118] sm:$0x3f]  ;;  %v749_v44 = vadd.f32 %v397_v37, %v45_v36  ;;  %v48_v45 = vld [vmem:[%s4960_s0 + $0x128] sm:$0x3f]  ;;  %v751_v50 = vadd.f32 %v399_v43, %v47_v42 }
  0x1b   :  { %1091 = vst.msk [vmem:[%s4962_s2 + $0xb0] sm:$0xff] %vm1067_vm0, %v737_v8  ;;  %v400_v46 = vld [vmem:[%s4961_s1 + $0x128] sm:$0x3f]  ;;  %v750_v47 = vadd.f32 %v398_v40, %v46_v39  ;;  %v49_v48 = vld [vmem:[%s4960_s0 + $0x130] sm:$0xff]  ;;  %v50_v51 = vld [vmem:[%s4960_s0 + $0x138] sm:$0x3f] }
  0x1c   :  { %1092 = vst.msk [vmem:[%s4962_s2 + $0xb8] sm:$0x3f] %vm1069_vm1, %v738_v11  ;;  %v401_v49 = vld [vmem:[%s4961_s1 + $0x130] sm:$0xff]  ;;  %v402_v52 = vld [vmem:[%s4961_s1 + $0x138] sm:$0x3f]  ;;  %v752_v53 = vadd.f32 %v400_v46, %v48_v45  ;;  %v51_v54 = vld [vmem:[%s4960_s0 + $0x140] sm:$0xff] }
  0x1d   :  { %1093 = vst.msk [vmem:[%s4962_s2 + $0xc0] sm:$0xff] %vm1067_vm0, %v739_v14  ;;  %v403_v55 = vld [vmem:[%s4961_s1 + $0x140] sm:$0xff]  ;;  %v753_v56 = vadd.f32 %v401_v49, %v49_v48  ;;  %v52_v57 = vld [vmem:[%s4960_s0 + $0x148] sm:$0x3f]  ;;  %v754_v59 = vadd.f32 %v402_v52, %v50_v51  ;;  %v53_v60 = vld [vmem:[%s4960_s0 + $0x150] sm:$0xff] }
  0x1e   :  { %1094 = vst.msk [vmem:[%s4962_s2 + $0xc8] sm:$0x3f] %vm1069_vm1, %v740_v17  ;;  %v404_v58 = vld [vmem:[%s4961_s1 + $0x148] sm:$0x3f]  ;;  %v405_v61 = vld [vmem:[%s4961_s1 + $0x150] sm:$0xff]  ;;  %v755_v62 = vadd.f32 %v403_v55, %v51_v54  ;;  %v55_v2 = vld [vmem:[%s4960_s0 + $0x160] sm:$0xff] }
  0x1f   :  { %1095 = vst.msk [vmem:[%s4962_s2 + $0xd0] sm:$0xff] %vm1067_vm0, %v741_v20  ;;  %v54_v63 = vld [vmem:[%s4960_s0 + $0x158] sm:$0x3f]  ;;  %v756_v1 = vadd.f32 %v404_v58, %v52_v57  ;;  %v407_v3 = vld [vmem:[%s4961_s1 + $0x160] sm:$0xff]  ;;  %v757_v4 = vadd.f32 %v405_v61, %v53_v60  ;;  %v56_v5 = vld [vmem:[%s4960_s0 + $0x168] sm:$0x3f] }
  0x20   :  { %1096 = vst.msk [vmem:[%s4962_s2 + $0xd8] sm:$0x3f] %vm1069_vm1, %v742_v23  ;;  %v406_v0 = vld [vmem:[%s4961_s1 + $0x158] sm:$0x3f]  ;;  %v408_v6 = vld [vmem:[%s4961_s1 + $0x168] sm:$0x3f]  ;;  %v759_v10 = vadd.f32 %v407_v3, %v55_v2 }
  0x21   :  { %1097 = vst.msk [vmem:[%s4962_s2 + $0xe0] sm:$0xff] %vm1067_vm0, %v743_v26  ;;  %v758_v7 = vadd.f32 %v406_v0, %v54_v63  ;;  %v57_v8 = vld [vmem:[%s4960_s0 + $0x170] sm:$0xff]  ;;  %v58_v11 = vld [vmem:[%s4960_s0 + $0x178] sm:$0x3f]  ;;  %v760_v13 = vadd.f32 %v408_v6, %v56_v5  ;;  %v59_v14 = vld [vmem:[%s4960_s0 + $0x180] sm:$0xff] }
  0x22   :  { %1098 = vst.msk [vmem:[%s4962_s2 + $0xe8] sm:$0x3f] %vm1069_vm1, %v744_v29  ;;  %v409_v9 = vld [vmem:[%s4961_s1 + $0x170] sm:$0xff]  ;;  %v410_v12 = vld [vmem:[%s4961_s1 + $0x178] sm:$0x3f]  ;;  %v411_v15 = vld [vmem:[%s4961_s1 + $0x180] sm:$0xff] }
  0x23   :  { %1099 = vst.msk [vmem:[%s4962_s2 + $0xf0] sm:$0xff] %vm1067_vm0, %v745_v32  ;;  %v761_v16 = vadd.f32 %v409_v9, %v57_v8  ;;  %v60_v17 = vld [vmem:[%s4960_s0 + $0x188] sm:$0x3f]  ;;  %v762_v19 = vadd.f32 %v410_v12, %v58_v11  ;;  %v61_v20 = vld [vmem:[%s4960_s0 + $0x190] sm:$0xff]  ;;  %v763_v22 = vadd.f32 %v411_v15, %v59_v14  ;;  %v62_v23 = vld [vmem:[%s4960_s0 + $0x198] sm:$0x3f] }
  0x24   :  { %1100 = vst.msk [vmem:[%s4962_s2 + $0xf8] sm:$0x3f] %vm1069_vm1, %v746_v35  ;;  %v412_v18 = vld [vmem:[%s4961_s1 + $0x188] sm:$0x3f]  ;;  %v413_v21 = vld [vmem:[%s4961_s1 + $0x190] sm:$0xff]  ;;  %v63_v26 = vld [vmem:[%s4960_s0 + $0x1a0] sm:$0xff] }
  0x25   :  { %1101 = vst.msk [vmem:[%s4962_s2 + $0x100] sm:$0xff] %vm1067_vm0, %v747_v38  ;;  %v414_v24 = vld [vmem:[%s4961_s1 + $0x198] sm:$0x3f]  ;;  %v764_v25 = vadd.f32 %v412_v18, %v60_v17  ;;  %v415_v27 = vld [vmem:[%s4961_s1 + $0x1a0] sm:$0xff]  ;;  %v765_v28 = vadd.f32 %v413_v21, %v61_v20  ;;  %v64_v29 = vld [vmem:[%s4960_s0 + $0x1a8] sm:$0x3f] }
  0x26   :  { %1102 = vst.msk [vmem:[%s4962_s2 + $0x108] sm:$0x3f] %vm1069_vm1, %v748_v41  ;;  %v416_v30 = vld [vmem:[%s4961_s1 + $0x1a8] sm:$0x3f]  ;;  %v766_v31 = vadd.f32 %v414_v24, %v62_v23  ;;  %v65_v32 = vld [vmem:[%s4960_s0 + $0x1b0] sm:$0xff]  ;;  %v767_v34 = vadd.f32 %v415_v27, %v63_v26  ;;  %v67_v38 = vld [vmem:[%s4960_s0 + $0x1c0] sm:$0xff] }
  0x27   :  { %1103 = vst.msk [vmem:[%s4962_s2 + $0x110] sm:$0xff] %vm1067_vm0, %v749_v44  ;;  %v417_v33 = vld [vmem:[%s4961_s1 + $0x1b0] sm:$0xff]  ;;  %v66_v35 = vld [vmem:[%s4960_s0 + $0x1b8] sm:$0x3f]  ;;  %v768_v37 = vadd.f32 %v416_v30, %v64_v29  ;;  %v419_v39 = vld [vmem:[%s4961_s1 + $0x1c0] sm:$0xff] }
  0x28   :  { %1104 = vst.msk [vmem:[%s4962_s2 + $0x118] sm:$0x3f] %vm1069_vm1, %v750_v47  ;;  %v418_v36 = vld [vmem:[%s4961_s1 + $0x1b8] sm:$0x3f]  ;;  %v769_v40 = vadd.f32 %v417_v33, %v65_v32  ;;  %v68_v41 = vld [vmem:[%s4960_s0 + $0x1c8] sm:$0x3f]  ;;  %v771_v46 = vadd.f32 %v419_v39, %v67_v38 }
  0x29   :  { %1105 = vst.msk [vmem:[%s4962_s2 + $0x120] sm:$0xff] %vm1067_vm0, %v751_v50  ;;  %v420_v42 = vld [vmem:[%s4961_s1 + $0x1c8] sm:$0x3f]  ;;  %v770_v43 = vadd.f32 %v418_v36, %v66_v35  ;;  %v69_v44 = vld [vmem:[%s4960_s0 + $0x1d0] sm:$0xff]  ;;  %v70_v47 = vld [vmem:[%s4960_s0 + $0x1d8] sm:$0x3f] }
  0x2a   :  { %1106 = vst.msk [vmem:[%s4962_s2 + $0x128] sm:$0x3f] %vm1069_vm1, %v752_v53  ;;  %v421_v45 = vld [vmem:[%s4961_s1 + $0x1d0] sm:$0xff]  ;;  %v422_v48 = vld [vmem:[%s4961_s1 + $0x1d8] sm:$0x3f]  ;;  %v772_v49 = vadd.f32 %v420_v42, %v68_v41  ;;  %v71_v50 = vld [vmem:[%s4960_s0 + $0x1e0] sm:$0xff] }
  0x2b   :  { %1107 = vst.msk [vmem:[%s4962_s2 + $0x130] sm:$0xff] %vm1067_vm0, %v753_v56  ;;  %v423_v51 = vld [vmem:[%s4961_s1 + $0x1e0] sm:$0xff]  ;;  %v773_v52 = vadd.f32 %v421_v45, %v69_v44  ;;  %v72_v53 = vld [vmem:[%s4960_s0 + $0x1e8] sm:$0x3f]  ;;  %v774_v55 = vadd.f32 %v422_v48, %v70_v47  ;;  %v73_v56 = vld [vmem:[%s4960_s0 + $0x1f0] sm:$0xff] }
  0x2c   :  { %1108 = vst.msk [vmem:[%s4962_s2 + $0x138] sm:$0x3f] %vm1069_vm1, %v754_v59  ;;  %v424_v54 = vld [vmem:[%s4961_s1 + $0x1e8] sm:$0x3f]  ;;  %v425_v57 = vld [vmem:[%s4961_s1 + $0x1f0] sm:$0xff]  ;;  %v775_v58 = vadd.f32 %v423_v51, %v71_v50  ;;  %v427_v63 = vld [vmem:[%s4961_s1 + $0x200] sm:$0xff] }
  0x2d   :  { %1109 = vst.msk [vmem:[%s4962_s2 + $0x140] sm:$0xff] %vm1067_vm0, %v755_v62  ;;  %v74_v59 = vld [vmem:[%s4960_s0 + $0x1f8] sm:$0x3f]  ;;  %v776_v61 = vadd.f32 %v424_v54, %v72_v53  ;;  %v75_v62 = vld [vmem:[%s4960_s0 + $0x200] sm:$0xff]  ;;  %v777_v0 = vadd.f32 %v425_v57, %v73_v56  ;;  %v428_v2 = vld [vmem:[%s4961_s1 + $0x208] sm:$0x3f] }
  0x2e   :  { %1110 = vst.msk [vmem:[%s4962_s2 + $0x148] sm:$0x3f] %vm1069_vm1, %v756_v1  ;;  %v426_v60 = vld [vmem:[%s4961_s1 + $0x1f8] sm:$0x3f]  ;;  %v76_v1 = vld [vmem:[%s4960_s0 + $0x208] sm:$0x3f]  ;;  %v779_v6 = vadd.f32 %v427_v63, %v75_v62 }
  0x2f   :  { %1111 = vst.msk [vmem:[%s4962_s2 + $0x150] sm:$0xff] %vm1067_vm0, %v757_v4  ;;  %v778_v3 = vadd.f32 %v426_v60, %v74_v59  ;;  %v77_v4 = vld [vmem:[%s4960_s0 + $0x210] sm:$0xff]  ;;  %v430_v8 = vld [vmem:[%s4961_s1 + $0x218] sm:$0x3f]  ;;  %v780_v9 = vadd.f32 %v428_v2, %v76_v1  ;;  %v431_v11 = vld [vmem:[%s4961_s1 + $0x220] sm:$0xff] }
  0x30   :  { %1112 = vst.msk [vmem:[%s4962_s2 + $0x158] sm:$0x3f] %vm1069_vm1, %v758_v7  ;;  %v429_v5 = vld [vmem:[%s4961_s1 + $0x210] sm:$0xff]  ;;  %v78_v7 = vld [vmem:[%s4960_s0 + $0x218] sm:$0x3f]  ;;  %v435_v23 = vld [vmem:[%s4961_s1 + $0x240] sm:$0xff] }
  0x31   :  { %1113 = vst.msk [vmem:[%s4962_s2 + $0x160] sm:$0xff] %vm1067_vm0, %v759_v10  ;;  %v79_v10 = vld [vmem:[%s4960_s0 + $0x220] sm:$0xff]  ;;  %v781_v12 = vadd.f32 %v429_v5, %v77_v4  ;;  %v432_v14 = vld [vmem:[%s4961_s1 + $0x228] sm:$0x3f]  ;;  %v782_v15 = vadd.f32 %v430_v8, %v78_v7  ;;  %v433_v17 = vld [vmem:[%s4961_s1 + $0x230] sm:$0xff] }
  0x32   :  { %1114 = vst.msk [vmem:[%s4962_s2 + $0x168] sm:$0x3f] %vm1069_vm1, %v760_v13  ;;  %v80_v13 = vld [vmem:[%s4960_s0 + $0x228] sm:$0x3f]  ;;  %v783_v18 = vadd.f32 %v431_v11, %v79_v10  ;;  %v434_v20 = vld [vmem:[%s4961_s1 + $0x238] sm:$0x3f] }
  0x33   :  { %1115 = vst.msk [vmem:[%s4962_s2 + $0x170] sm:$0xff] %vm1067_vm0, %v761_v16  ;;  %v81_v16 = vld [vmem:[%s4960_s0 + $0x230] sm:$0xff]  ;;  %v784_v21 = vadd.f32 %v432_v14, %v80_v13  ;;  %v436_v26 = vld [vmem:[%s4961_s1 + $0x248] sm:$0x3f]  ;;  %v438_v32 = vld [vmem:[%s4961_s1 + $0x258] sm:$0x3f] }
  0x34   :  { %1116 = vst.msk [vmem:[%s4962_s2 + $0x178] sm:$0x3f] %vm1069_vm1, %v762_v19  ;;  %v82_v19 = vld [vmem:[%s4960_s0 + $0x238] sm:$0x3f]  ;;  %v785_v24 = vadd.f32 %v433_v17, %v81_v16  ;;  %v437_v29 = vld [vmem:[%s4961_s1 + $0x250] sm:$0xff]  ;;  %v439_v35 = vld [vmem:[%s4961_s1 + $0x260] sm:$0xff] }
  0x35   :  { %1117 = vst.msk [vmem:[%s4962_s2 + $0x180] sm:$0xff] %vm1067_vm0, %v763_v22  ;;  %v83_v22 = vld [vmem:[%s4960_s0 + $0x240] sm:$0xff]  ;;  %v786_v27 = vadd.f32 %v434_v20, %v82_v19  ;;  %v440_v38 = vld [vmem:[%s4961_s1 + $0x268] sm:$0x3f]  ;;  %v441_v41 = vld [vmem:[%s4961_s1 + $0x270] sm:$0xff] }
  0x36   :  { %1118 = vst.msk [vmem:[%s4962_s2 + $0x188] sm:$0x3f] %vm1069_vm1, %v764_v25  ;;  %v84_v25 = vld [vmem:[%s4960_s0 + $0x248] sm:$0x3f]  ;;  %v787_v30 = vadd.f32 %v435_v23, %v83_v22  ;;  %v442_v44 = vld [vmem:[%s4961_s1 + $0x278] sm:$0x3f] }
  0x37   :  { %1119 = vst.msk [vmem:[%s4962_s2 + $0x190] sm:$0xff] %vm1067_vm0, %v765_v28  ;;  %v85_v28 = vld [vmem:[%s4960_s0 + $0x250] sm:$0xff]  ;;  %v788_v33 = vadd.f32 %v436_v26, %v84_v25  ;;  %v443_v47 = vld [vmem:[%s4961_s1 + $0x280] sm:$0xff]  ;;  %v444_v50 = vld [vmem:[%s4961_s1 + $0x288] sm:$0x3f] }
  0x38   :  { %1120 = vst.msk [vmem:[%s4962_s2 + $0x198] sm:$0x3f] %vm1069_vm1, %v766_v31  ;;  %v86_v31 = vld [vmem:[%s4960_s0 + $0x258] sm:$0x3f]  ;;  %v789_v36 = vadd.f32 %v437_v29, %v85_v28  ;;  %v445_v53 = vld [vmem:[%s4961_s1 + $0x290] sm:$0xff]  ;;  %v447_v59 = vld [vmem:[%s4961_s1 + $0x2a0] sm:$0xff] }
  0x39   :  { %1121 = vst.msk [vmem:[%s4962_s2 + $0x1a0] sm:$0xff] %vm1067_vm0, %v767_v34  ;;  %v87_v34 = vld [vmem:[%s4960_s0 + $0x260] sm:$0xff]  ;;  %v790_v39 = vadd.f32 %v438_v32, %v86_v31  ;;  %v446_v56 = vld [vmem:[%s4961_s1 + $0x298] sm:$0x3f]  ;;  %v448_v62 = vld [vmem:[%s4961_s1 + $0x2a8] sm:$0x3f] }
  0x3a   :  { %1122 = vst.msk [vmem:[%s4962_s2 + $0x1a8] sm:$0x3f] %vm1069_vm1, %v768_v37  ;;  %v88_v37 = vld [vmem:[%s4960_s0 + $0x268] sm:$0x3f]  ;;  %v791_v42 = vadd.f32 %v439_v35, %v87_v34  ;;  %v449_v1 = vld [vmem:[%s4961_s1 + $0x2b0] sm:$0xff]  ;;  %v451_v7 = vld [vmem:[%s4961_s1 + $0x2c0] sm:$0xff] }
  0x3b   :  { %1123 = vst.msk [vmem:[%s4962_s2 + $0x1b0] sm:$0xff] %vm1067_vm0, %v769_v40  ;;  %v89_v40 = vld [vmem:[%s4960_s0 + $0x270] sm:$0xff]  ;;  %v792_v45 = vadd.f32 %v440_v38, %v88_v37  ;;  %v450_v4 = vld [vmem:[%s4961_s1 + $0x2b8] sm:$0x3f]  ;;  %v452_v10 = vld [vmem:[%s4961_s1 + $0x2c8] sm:$0x3f] }
  0x3c   :  { %1124 = vst.msk [vmem:[%s4962_s2 + $0x1b8] sm:$0x3f] %vm1069_vm1, %v770_v43  ;;  %v90_v43 = vld [vmem:[%s4960_s0 + $0x278] sm:$0x3f]  ;;  %v793_v48 = vadd.f32 %v441_v41, %v89_v40  ;;  %v453_v13 = vld [vmem:[%s4961_s1 + $0x2d0] sm:$0xff]  ;;  %v455_v19 = vld [vmem:[%s4961_s1 + $0x2e0] sm:$0xff] }
  0x3d   :  { %1125 = vst.msk [vmem:[%s4962_s2 + $0x1c0] sm:$0xff] %vm1067_vm0, %v771_v46  ;;  %v91_v46 = vld [vmem:[%s4960_s0 + $0x280] sm:$0xff]  ;;  %v794_v51 = vadd.f32 %v442_v44, %v90_v43  ;;  %v454_v16 = vld [vmem:[%s4961_s1 + $0x2d8] sm:$0x3f]  ;;  %v456_v22 = vld [vmem:[%s4961_s1 + $0x2e8] sm:$0x3f] }
  0x3e   :  { %1126 = vst.msk [vmem:[%s4962_s2 + $0x1c8] sm:$0x3f] %vm1069_vm1, %v772_v49  ;;  %v92_v49 = vld [vmem:[%s4960_s0 + $0x288] sm:$0x3f]  ;;  %v795_v54 = vadd.f32 %v443_v47, %v91_v46  ;;  %v457_v25 = vld [vmem:[%s4961_s1 + $0x2f0] sm:$0xff]  ;;  %v459_v31 = vld [vmem:[%s4961_s1 + $0x300] sm:$0xff] }
  0x3f   :  { %1127 = vst.msk [vmem:[%s4962_s2 + $0x1d0] sm:$0xff] %vm1067_vm0, %v773_v52  ;;  %v93_v52 = vld [vmem:[%s4960_s0 + $0x290] sm:$0xff]  ;;  %v796_v57 = vadd.f32 %v444_v50, %v92_v49  ;;  %v458_v28 = vld [vmem:[%s4961_s1 + $0x2f8] sm:$0x3f]  ;;  %v460_v34 = vld [vmem:[%s4961_s1 + $0x308] sm:$0x3f] }
  0x40   :  { %1128 = vst.msk [vmem:[%s4962_s2 + $0x1d8] sm:$0x3f] %vm1069_vm1, %v774_v55  ;;  %v94_v55 = vld [vmem:[%s4960_s0 + $0x298] sm:$0x3f]  ;;  %v797_v60 = vadd.f32 %v445_v53, %v93_v52  ;;  %v461_v37 = vld [vmem:[%s4961_s1 + $0x310] sm:$0xff]  ;;  %v463_v43 = vld [vmem:[%s4961_s1 + $0x320] sm:$0xff] }
  0x41   :  { %1129 = vst.msk [vmem:[%s4962_s2 + $0x1e0] sm:$0xff] %vm1067_vm0, %v775_v58  ;;  %v95_v58 = vld [vmem:[%s4960_s0 + $0x2a0] sm:$0xff]  ;;  %v798_v63 = vadd.f32 %v446_v56, %v94_v55  ;;  %v462_v40 = vld [vmem:[%s4961_s1 + $0x318] sm:$0x3f]  ;;  %v464_v46 = vld [vmem:[%s4961_s1 + $0x328] sm:$0x3f] }
  0x42   :  { %1130 = vst.msk [vmem:[%s4962_s2 + $0x1e8] sm:$0x3f] %vm1069_vm1, %v776_v61  ;;  %v96_v61 = vld [vmem:[%s4960_s0 + $0x2a8] sm:$0x3f]  ;;  %v799_v2 = vadd.f32 %v447_v59, %v95_v58  ;;  %v465_v49 = vld [vmem:[%s4961_s1 + $0x330] sm:$0xff]  ;;  %v467_v55 = vld [vmem:[%s4961_s1 + $0x340] sm:$0xff] }
  0x43   :  { %1131 = vst.msk [vmem:[%s4962_s2 + $0x1f0] sm:$0xff] %vm1067_vm0, %v777_v0  ;;  %v97_v0 = vld [vmem:[%s4960_s0 + $0x2b0] sm:$0xff]  ;;  %v800_v5 = vadd.f32 %v448_v62, %v96_v61  ;;  %v466_v52 = vld [vmem:[%s4961_s1 + $0x338] sm:$0x3f]  ;;  %v468_v58 = vld [vmem:[%s4961_s1 + $0x348] sm:$0x3f] }
  0x44   :  { %1132 = vst.msk [vmem:[%s4962_s2 + $0x1f8] sm:$0x3f] %vm1069_vm1, %v778_v3  ;;  %v98_v3 = vld [vmem:[%s4960_s0 + $0x2b8] sm:$0x3f]  ;;  %v801_v8 = vadd.f32 %v449_v1, %v97_v0  ;;  %v469_v61 = vld [vmem:[%s4961_s1 + $0x350] sm:$0xff] }
  0x45   :  { %1133 = vst.msk [vmem:[%s4962_s2 + $0x200] sm:$0xff] %vm1067_vm0, %v779_v6  ;;  %v99_v6 = vld [vmem:[%s4960_s0 + $0x2c0] sm:$0xff]  ;;  %v802_v11 = vadd.f32 %v450_v4, %v98_v3  ;;  %v470_v0 = vld [vmem:[%s4961_s1 + $0x358] sm:$0x3f] }
  0x46   :  { %1134 = vst.msk [vmem:[%s4962_s2 + $0x208] sm:$0x3f] %vm1069_vm1, %v780_v9  ;;  %v100_v9 = vld [vmem:[%s4960_s0 + $0x2c8] sm:$0x3f]  ;;  %v803_v14 = vadd.f32 %v451_v7, %v99_v6  ;;  %v471_v3 = vld [vmem:[%s4961_s1 + $0x360] sm:$0xff] }
  0x47   :  { %1135 = vst.msk [vmem:[%s4962_s2 + $0x210] sm:$0xff] %vm1067_vm0, %v781_v12  ;;  %v101_v12 = vld [vmem:[%s4960_s0 + $0x2d0] sm:$0xff]  ;;  %v804_v17 = vadd.f32 %v452_v10, %v100_v9  ;;  %v472_v6 = vld [vmem:[%s4961_s1 + $0x368] sm:$0x3f] }
  0x48   :  { %1136 = vst.msk [vmem:[%s4962_s2 + $0x218] sm:$0x3f] %vm1069_vm1, %v782_v15  ;;  %v102_v15 = vld [vmem:[%s4960_s0 + $0x2d8] sm:$0x3f]  ;;  %v805_v20 = vadd.f32 %v453_v13, %v101_v12  ;;  %v473_v9 = vld [vmem:[%s4961_s1 + $0x370] sm:$0xff] }
  0x49   :  { %1137 = vst.msk [vmem:[%s4962_s2 + $0x220] sm:$0xff] %vm1067_vm0, %v783_v18  ;;  %v103_v18 = vld [vmem:[%s4960_s0 + $0x2e0] sm:$0xff]  ;;  %v806_v23 = vadd.f32 %v454_v16, %v102_v15  ;;  %v474_v12 = vld [vmem:[%s4961_s1 + $0x378] sm:$0x3f] }
  0x4a   :  { %1138 = vst.msk [vmem:[%s4962_s2 + $0x228] sm:$0x3f] %vm1069_vm1, %v784_v21  ;;  %v104_v21 = vld [vmem:[%s4960_s0 + $0x2e8] sm:$0x3f]  ;;  %v807_v26 = vadd.f32 %v455_v19, %v103_v18  ;;  %v475_v15 = vld [vmem:[%s4961_s1 + $0x380] sm:$0xff] }
  0x4b   :  { %1139 = vst.msk [vmem:[%s4962_s2 + $0x230] sm:$0xff] %vm1067_vm0, %v785_v24  ;;  %v105_v24 = vld [vmem:[%s4960_s0 + $0x2f0] sm:$0xff]  ;;  %v808_v29 = vadd.f32 %v456_v22, %v104_v21  ;;  %v476_v18 = vld [vmem:[%s4961_s1 + $0x388] sm:$0x3f] }
  0x4c   :  { %1140 = vst.msk [vmem:[%s4962_s2 + $0x238] sm:$0x3f] %vm1069_vm1, %v786_v27  ;;  %v106_v27 = vld [vmem:[%s4960_s0 + $0x2f8] sm:$0x3f]  ;;  %v809_v32 = vadd.f32 %v457_v25, %v105_v24  ;;  %v477_v21 = vld [vmem:[%s4961_s1 + $0x390] sm:$0xff] }
  0x4d   :  { %1141 = vst.msk [vmem:[%s4962_s2 + $0x240] sm:$0xff] %vm1067_vm0, %v787_v30  ;;  %v107_v30 = vld [vmem:[%s4960_s0 + $0x300] sm:$0xff]  ;;  %v810_v35 = vadd.f32 %v458_v28, %v106_v27  ;;  %v478_v24 = vld [vmem:[%s4961_s1 + $0x398] sm:$0x3f] }
  0x4e   :  { %1142 = vst.msk [vmem:[%s4962_s2 + $0x248] sm:$0x3f] %vm1069_vm1, %v788_v33  ;;  %v108_v33 = vld [vmem:[%s4960_s0 + $0x308] sm:$0x3f]  ;;  %v811_v38 = vadd.f32 %v459_v31, %v107_v30  ;;  %v479_v27 = vld [vmem:[%s4961_s1 + $0x3a0] sm:$0xff] }
  0x4f   :  { %1143 = vst.msk [vmem:[%s4962_s2 + $0x250] sm:$0xff] %vm1067_vm0, %v789_v36  ;;  %v109_v36 = vld [vmem:[%s4960_s0 + $0x310] sm:$0xff]  ;;  %v812_v41 = vadd.f32 %v460_v34, %v108_v33  ;;  %v480_v30 = vld [vmem:[%s4961_s1 + $0x3a8] sm:$0x3f] }
  0x50   :  { %1144 = vst.msk [vmem:[%s4962_s2 + $0x258] sm:$0x3f] %vm1069_vm1, %v790_v39  ;;  %v110_v39 = vld [vmem:[%s4960_s0 + $0x318] sm:$0x3f]  ;;  %v813_v44 = vadd.f32 %v461_v37, %v109_v36  ;;  %v481_v33 = vld [vmem:[%s4961_s1 + $0x3b0] sm:$0xff] }
  0x51   :  { %1145 = vst.msk [vmem:[%s4962_s2 + $0x260] sm:$0xff] %vm1067_vm0, %v791_v42  ;;  %v111_v42 = vld [vmem:[%s4960_s0 + $0x320] sm:$0xff]  ;;  %v814_v47 = vadd.f32 %v462_v40, %v110_v39  ;;  %v482_v36 = vld [vmem:[%s4961_s1 + $0x3b8] sm:$0x3f] }
  0x52   :  { %1146 = vst.msk [vmem:[%s4962_s2 + $0x268] sm:$0x3f] %vm1069_vm1, %v792_v45  ;;  %v112_v45 = vld [vmem:[%s4960_s0 + $0x328] sm:$0x3f]  ;;  %v815_v50 = vadd.f32 %v463_v43, %v111_v42  ;;  %v483_v39 = vld [vmem:[%s4961_s1 + $0x3c0] sm:$0xff] }
  0x53   :  { %1147 = vst.msk [vmem:[%s4962_s2 + $0x270] sm:$0xff] %vm1067_vm0, %v793_v48  ;;  %v113_v48 = vld [vmem:[%s4960_s0 + $0x330] sm:$0xff]  ;;  %v816_v53 = vadd.f32 %v464_v46, %v112_v45  ;;  %v484_v42 = vld [vmem:[%s4961_s1 + $0x3c8] sm:$0x3f] }
  0x54   :  { %1148 = vst.msk [vmem:[%s4962_s2 + $0x278] sm:$0x3f] %vm1069_vm1, %v794_v51  ;;  %v114_v51 = vld [vmem:[%s4960_s0 + $0x338] sm:$0x3f]  ;;  %v817_v56 = vadd.f32 %v465_v49, %v113_v48  ;;  %v485_v45 = vld [vmem:[%s4961_s1 + $0x3d0] sm:$0xff] }
  0x55   :  { %1149 = vst.msk [vmem:[%s4962_s2 + $0x280] sm:$0xff] %vm1067_vm0, %v795_v54  ;;  %v115_v54 = vld [vmem:[%s4960_s0 + $0x340] sm:$0xff]  ;;  %v818_v59 = vadd.f32 %v466_v52, %v114_v51  ;;  %v486_v48 = vld [vmem:[%s4961_s1 + $0x3d8] sm:$0x3f] }
  0x56   :  { %1150 = vst.msk [vmem:[%s4962_s2 + $0x288] sm:$0x3f] %vm1069_vm1, %v796_v57  ;;  %v116_v57 = vld [vmem:[%s4960_s0 + $0x348] sm:$0x3f]  ;;  %v819_v62 = vadd.f32 %v467_v55, %v115_v54  ;;  %v487_v51 = vld [vmem:[%s4961_s1 + $0x3e0] sm:$0xff] }
  0x57   :  { %1151 = vst.msk [vmem:[%s4962_s2 + $0x290] sm:$0xff] %vm1067_vm0, %v797_v60  ;;  %v117_v60 = vld [vmem:[%s4960_s0 + $0x350] sm:$0xff]  ;;  %v820_v1 = vadd.f32 %v468_v58, %v116_v57  ;;  %v488_v54 = vld [vmem:[%s4961_s1 + $0x3e8] sm:$0x3f] }
  0x58   :  { %1152 = vst.msk [vmem:[%s4962_s2 + $0x298] sm:$0x3f] %vm1069_vm1, %v798_v63  ;;  %v118_v63 = vld [vmem:[%s4960_s0 + $0x358] sm:$0x3f]  ;;  %v821_v4 = vadd.f32 %v469_v61, %v117_v60  ;;  %v489_v57 = vld [vmem:[%s4961_s1 + $0x3f0] sm:$0xff] }
  0x59   :  { %1153 = vst.msk [vmem:[%s4962_s2 + $0x2a0] sm:$0xff] %vm1067_vm0, %v799_v2  ;;  %v119_v2 = vld [vmem:[%s4960_s0 + $0x360] sm:$0xff]  ;;  %v822_v7 = vadd.f32 %v470_v0, %v118_v63  ;;  %v490_v60 = vld [vmem:[%s4961_s1 + $0x3f8] sm:$0x3f] }
  0x5a   :  { %1154 = vst.msk [vmem:[%s4962_s2 + $0x2a8] sm:$0x3f] %vm1069_vm1, %v800_v5  ;;  %v120_v5 = vld [vmem:[%s4960_s0 + $0x368] sm:$0x3f]  ;;  %v823_v10 = vadd.f32 %v471_v3, %v119_v2  ;;  %v491_v63 = vld [vmem:[%s4961_s1 + $0x400] sm:$0xff] }
  0x5b   :  { %1155 = vst.msk [vmem:[%s4962_s2 + $0x2b0] sm:$0xff] %vm1067_vm0, %v801_v8  ;;  %v121_v8 = vld [vmem:[%s4960_s0 + $0x370] sm:$0xff]  ;;  %v824_v13 = vadd.f32 %v472_v6, %v120_v5  ;;  %v492_v2 = vld [vmem:[%s4961_s1 + $0x408] sm:$0x3f] }
  0x5c   :  { %1156 = vst.msk [vmem:[%s4962_s2 + $0x2b8] sm:$0x3f] %vm1069_vm1, %v802_v11  ;;  %v122_v11 = vld [vmem:[%s4960_s0 + $0x378] sm:$0x3f]  ;;  %v825_v16 = vadd.f32 %v473_v9, %v121_v8  ;;  %v493_v5 = vld [vmem:[%s4961_s1 + $0x410] sm:$0xff] }
  0x5d   :  { %1157 = vst.msk [vmem:[%s4962_s2 + $0x2c0] sm:$0xff] %vm1067_vm0, %v803_v14  ;;  %v123_v14 = vld [vmem:[%s4960_s0 + $0x380] sm:$0xff]  ;;  %v826_v19 = vadd.f32 %v474_v12, %v122_v11  ;;  %v494_v8 = vld [vmem:[%s4961_s1 + $0x418] sm:$0x3f] }
  0x5e   :  { %1158 = vst.msk [vmem:[%s4962_s2 + $0x2c8] sm:$0x3f] %vm1069_vm1, %v804_v17  ;;  %v124_v17 = vld [vmem:[%s4960_s0 + $0x388] sm:$0x3f]  ;;  %v827_v22 = vadd.f32 %v475_v15, %v123_v14  ;;  %v495_v11 = vld [vmem:[%s4961_s1 + $0x420] sm:$0xff] }
  0x5f   :  { %1159 = vst.msk [vmem:[%s4962_s2 + $0x2d0] sm:$0xff] %vm1067_vm0, %v805_v20  ;;  %v125_v20 = vld [vmem:[%s4960_s0 + $0x390] sm:$0xff]  ;;  %v828_v25 = vadd.f32 %v476_v18, %v124_v17  ;;  %v496_v14 = vld [vmem:[%s4961_s1 + $0x428] sm:$0x3f] }
  0x60   :  { %1160 = vst.msk [vmem:[%s4962_s2 + $0x2d8] sm:$0x3f] %vm1069_vm1, %v806_v23  ;;  %v126_v23 = vld [vmem:[%s4960_s0 + $0x398] sm:$0x3f]  ;;  %v829_v28 = vadd.f32 %v477_v21, %v125_v20  ;;  %v497_v17 = vld [vmem:[%s4961_s1 + $0x430] sm:$0xff] }
  0x61   :  { %1161 = vst.msk [vmem:[%s4962_s2 + $0x2e0] sm:$0xff] %vm1067_vm0, %v807_v26  ;;  %v127_v26 = vld [vmem:[%s4960_s0 + $0x3a0] sm:$0xff]  ;;  %v830_v31 = vadd.f32 %v478_v24, %v126_v23  ;;  %v498_v20 = vld [vmem:[%s4961_s1 + $0x438] sm:$0x3f] }
  0x62   :  { %1162 = vst.msk [vmem:[%s4962_s2 + $0x2e8] sm:$0x3f] %vm1069_vm1, %v808_v29  ;;  %v128_v29 = vld [vmem:[%s4960_s0 + $0x3a8] sm:$0x3f]  ;;  %v831_v34 = vadd.f32 %v479_v27, %v127_v26  ;;  %v499_v23 = vld [vmem:[%s4961_s1 + $0x440] sm:$0xff] }
  0x63   :  { %1163 = vst.msk [vmem:[%s4962_s2 + $0x2f0] sm:$0xff] %vm1067_vm0, %v809_v32  ;;  %v129_v32 = vld [vmem:[%s4960_s0 + $0x3b0] sm:$0xff]  ;;  %v832_v37 = vadd.f32 %v480_v30, %v128_v29  ;;  %v500_v26 = vld [vmem:[%s4961_s1 + $0x448] sm:$0x3f] }
  0x64   :  { %1164 = vst.msk [vmem:[%s4962_s2 + $0x2f8] sm:$0x3f] %vm1069_vm1, %v810_v35  ;;  %v130_v35 = vld [vmem:[%s4960_s0 + $0x3b8] sm:$0x3f]  ;;  %v833_v40 = vadd.f32 %v481_v33, %v129_v32  ;;  %v501_v29 = vld [vmem:[%s4961_s1 + $0x450] sm:$0xff] }
  0x65   :  { %1165 = vst.msk [vmem:[%s4962_s2 + $0x300] sm:$0xff] %vm1067_vm0, %v811_v38  ;;  %v131_v38 = vld [vmem:[%s4960_s0 + $0x3c0] sm:$0xff]  ;;  %v834_v43 = vadd.f32 %v482_v36, %v130_v35  ;;  %v502_v32 = vld [vmem:[%s4961_s1 + $0x458] sm:$0x3f] }
  0x66   :  { %1166 = vst.msk [vmem:[%s4962_s2 + $0x308] sm:$0x3f] %vm1069_vm1, %v812_v41  ;;  %v132_v41 = vld [vmem:[%s4960_s0 + $0x3c8] sm:$0x3f]  ;;  %v835_v46 = vadd.f32 %v483_v39, %v131_v38  ;;  %v503_v35 = vld [vmem:[%s4961_s1 + $0x460] sm:$0xff] }
  0x67   :  { %1167 = vst.msk [vmem:[%s4962_s2 + $0x310] sm:$0xff] %vm1067_vm0, %v813_v44  ;;  %v133_v44 = vld [vmem:[%s4960_s0 + $0x3d0] sm:$0xff]  ;;  %v836_v49 = vadd.f32 %v484_v42, %v132_v41  ;;  %v504_v38 = vld [vmem:[%s4961_s1 + $0x468] sm:$0x3f] }
  0x68   :  { %1168 = vst.msk [vmem:[%s4962_s2 + $0x318] sm:$0x3f] %vm1069_vm1, %v814_v47  ;;  %v134_v47 = vld [vmem:[%s4960_s0 + $0x3d8] sm:$0x3f]  ;;  %v837_v52 = vadd.f32 %v485_v45, %v133_v44  ;;  %v505_v41 = vld [vmem:[%s4961_s1 + $0x470] sm:$0xff] }
  0x69   :  { %1169 = vst.msk [vmem:[%s4962_s2 + $0x320] sm:$0xff] %vm1067_vm0, %v815_v50  ;;  %v135_v50 = vld [vmem:[%s4960_s0 + $0x3e0] sm:$0xff]  ;;  %v838_v55 = vadd.f32 %v486_v48, %v134_v47  ;;  %v506_v44 = vld [vmem:[%s4961_s1 + $0x478] sm:$0x3f] }
  0x6a   :  { %1170 = vst.msk [vmem:[%s4962_s2 + $0x328] sm:$0x3f] %vm1069_vm1, %v816_v53  ;;  %v136_v53 = vld [vmem:[%s4960_s0 + $0x3e8] sm:$0x3f]  ;;  %v839_v58 = vadd.f32 %v487_v51, %v135_v50  ;;  %v507_v47 = vld [vmem:[%s4961_s1 + $0x480] sm:$0xff] }
  0x6b   :  { %1171 = vst.msk [vmem:[%s4962_s2 + $0x330] sm:$0xff] %vm1067_vm0, %v817_v56  ;;  %v137_v56 = vld [vmem:[%s4960_s0 + $0x3f0] sm:$0xff]  ;;  %v840_v61 = vadd.f32 %v488_v54, %v136_v53  ;;  %v508_v50 = vld [vmem:[%s4961_s1 + $0x488] sm:$0x3f] }
  0x6c   :  { %1172 = vst.msk [vmem:[%s4962_s2 + $0x338] sm:$0x3f] %vm1069_vm1, %v818_v59  ;;  %v138_v59 = vld [vmem:[%s4960_s0 + $0x3f8] sm:$0x3f]  ;;  %v841_v0 = vadd.f32 %v489_v57, %v137_v56  ;;  %v509_v53 = vld [vmem:[%s4961_s1 + $0x490] sm:$0xff] }
  0x6d   :  { %1173 = vst.msk [vmem:[%s4962_s2 + $0x340] sm:$0xff] %vm1067_vm0, %v819_v62  ;;  %v139_v62 = vld [vmem:[%s4960_s0 + $0x400] sm:$0xff]  ;;  %v842_v3 = vadd.f32 %v490_v60, %v138_v59  ;;  %v510_v56 = vld [vmem:[%s4961_s1 + $0x498] sm:$0x3f] }
  0x6e   :  { %1174 = vst.msk [vmem:[%s4962_s2 + $0x348] sm:$0x3f] %vm1069_vm1, %v820_v1  ;;  %v140_v1 = vld [vmem:[%s4960_s0 + $0x408] sm:$0x3f]  ;;  %v843_v6 = vadd.f32 %v491_v63, %v139_v62  ;;  %v511_v59 = vld [vmem:[%s4961_s1 + $0x4a0] sm:$0xff] }
  0x6f   :  { %1175 = vst.msk [vmem:[%s4962_s2 + $0x350] sm:$0xff] %vm1067_vm0, %v821_v4  ;;  %v141_v4 = vld [vmem:[%s4960_s0 + $0x410] sm:$0xff]  ;;  %v844_v9 = vadd.f32 %v492_v2, %v140_v1  ;;  %v512_v62 = vld [vmem:[%s4961_s1 + $0x4a8] sm:$0x3f] }
  0x70   :  { %1176 = vst.msk [vmem:[%s4962_s2 + $0x358] sm:$0x3f] %vm1069_vm1, %v822_v7  ;;  %v142_v7 = vld [vmem:[%s4960_s0 + $0x418] sm:$0x3f]  ;;  %v845_v12 = vadd.f32 %v493_v5, %v141_v4  ;;  %v513_v1 = vld [vmem:[%s4961_s1 + $0x4b0] sm:$0xff] }
  0x71   :  { %1177 = vst.msk [vmem:[%s4962_s2 + $0x360] sm:$0xff] %vm1067_vm0, %v823_v10  ;;  %v143_v10 = vld [vmem:[%s4960_s0 + $0x420] sm:$0xff]  ;;  %v846_v15 = vadd.f32 %v494_v8, %v142_v7  ;;  %v514_v4 = vld [vmem:[%s4961_s1 + $0x4b8] sm:$0x3f] }
  0x72   :  { %1178 = vst.msk [vmem:[%s4962_s2 + $0x368] sm:$0x3f] %vm1069_vm1, %v824_v13  ;;  %v144_v13 = vld [vmem:[%s4960_s0 + $0x428] sm:$0x3f]  ;;  %v847_v18 = vadd.f32 %v495_v11, %v143_v10  ;;  %v515_v7 = vld [vmem:[%s4961_s1 + $0x4c0] sm:$0xff] }
  0x73   :  { %1179 = vst.msk [vmem:[%s4962_s2 + $0x370] sm:$0xff] %vm1067_vm0, %v825_v16  ;;  %v145_v16 = vld [vmem:[%s4960_s0 + $0x430] sm:$0xff]  ;;  %v848_v21 = vadd.f32 %v496_v14, %v144_v13  ;;  %v516_v10 = vld [vmem:[%s4961_s1 + $0x4c8] sm:$0x3f] }
  0x74   :  { %1180 = vst.msk [vmem:[%s4962_s2 + $0x378] sm:$0x3f] %vm1069_vm1, %v826_v19  ;;  %v146_v19 = vld [vmem:[%s4960_s0 + $0x438] sm:$0x3f]  ;;  %v849_v24 = vadd.f32 %v497_v17, %v145_v16  ;;  %v517_v13 = vld [vmem:[%s4961_s1 + $0x4d0] sm:$0xff] }
  0x75   :  { %1181 = vst.msk [vmem:[%s4962_s2 + $0x380] sm:$0xff] %vm1067_vm0, %v827_v22  ;;  %v147_v22 = vld [vmem:[%s4960_s0 + $0x440] sm:$0xff]  ;;  %v850_v27 = vadd.f32 %v498_v20, %v146_v19  ;;  %v518_v16 = vld [vmem:[%s4961_s1 + $0x4d8] sm:$0x3f] }
  0x76   :  { %1182 = vst.msk [vmem:[%s4962_s2 + $0x388] sm:$0x3f] %vm1069_vm1, %v828_v25  ;;  %v148_v25 = vld [vmem:[%s4960_s0 + $0x448] sm:$0x3f]  ;;  %v851_v30 = vadd.f32 %v499_v23, %v147_v22  ;;  %v519_v19 = vld [vmem:[%s4961_s1 + $0x4e0] sm:$0xff] }
  0x77   :  { %1183 = vst.msk [vmem:[%s4962_s2 + $0x390] sm:$0xff] %vm1067_vm0, %v829_v28  ;;  %v149_v28 = vld [vmem:[%s4960_s0 + $0x450] sm:$0xff]  ;;  %v852_v33 = vadd.f32 %v500_v26, %v148_v25  ;;  %v520_v22 = vld [vmem:[%s4961_s1 + $0x4e8] sm:$0x3f] }
  0x78   :  { %1184 = vst.msk [vmem:[%s4962_s2 + $0x398] sm:$0x3f] %vm1069_vm1, %v830_v31  ;;  %v150_v31 = vld [vmem:[%s4960_s0 + $0x458] sm:$0x3f]  ;;  %v853_v36 = vadd.f32 %v501_v29, %v149_v28  ;;  %v521_v25 = vld [vmem:[%s4961_s1 + $0x4f0] sm:$0xff] }
  0x79   :  { %1185 = vst.msk [vmem:[%s4962_s2 + $0x3a0] sm:$0xff] %vm1067_vm0, %v831_v34  ;;  %v151_v34 = vld [vmem:[%s4960_s0 + $0x460] sm:$0xff]  ;;  %v854_v39 = vadd.f32 %v502_v32, %v150_v31  ;;  %v522_v28 = vld [vmem:[%s4961_s1 + $0x4f8] sm:$0x3f] }
  0x7a   :  { %1186 = vst.msk [vmem:[%s4962_s2 + $0x3a8] sm:$0x3f] %vm1069_vm1, %v832_v37  ;;  %v152_v37 = vld [vmem:[%s4960_s0 + $0x468] sm:$0x3f]  ;;  %v855_v42 = vadd.f32 %v503_v35, %v151_v34  ;;  %v523_v31 = vld [vmem:[%s4961_s1 + $0x500] sm:$0xff] }
  0x7b   :  { %1187 = vst.msk [vmem:[%s4962_s2 + $0x3b0] sm:$0xff] %vm1067_vm0, %v833_v40  ;;  %v153_v40 = vld [vmem:[%s4960_s0 + $0x470] sm:$0xff]  ;;  %v856_v45 = vadd.f32 %v504_v38, %v152_v37  ;;  %v524_v34 = vld [vmem:[%s4961_s1 + $0x508] sm:$0x3f] }
  0x7c   :  { %1188 = vst.msk [vmem:[%s4962_s2 + $0x3b8] sm:$0x3f] %vm1069_vm1, %v834_v43  ;;  %v154_v43 = vld [vmem:[%s4960_s0 + $0x478] sm:$0x3f]  ;;  %v857_v48 = vadd.f32 %v505_v41, %v153_v40  ;;  %v525_v37 = vld [vmem:[%s4961_s1 + $0x510] sm:$0xff] }
  0x7d   :  { %1189 = vst.msk [vmem:[%s4962_s2 + $0x3c0] sm:$0xff] %vm1067_vm0, %v835_v46  ;;  %v155_v46 = vld [vmem:[%s4960_s0 + $0x480] sm:$0xff]  ;;  %v858_v51 = vadd.f32 %v506_v44, %v154_v43  ;;  %v526_v40 = vld [vmem:[%s4961_s1 + $0x518] sm:$0x3f] }
  0x7e   :  { %1190 = vst.msk [vmem:[%s4962_s2 + $0x3c8] sm:$0x3f] %vm1069_vm1, %v836_v49  ;;  %v156_v49 = vld [vmem:[%s4960_s0 + $0x488] sm:$0x3f]  ;;  %v859_v54 = vadd.f32 %v507_v47, %v155_v46  ;;  %v527_v43 = vld [vmem:[%s4961_s1 + $0x520] sm:$0xff] }
  0x7f   :  { %1191 = vst.msk [vmem:[%s4962_s2 + $0x3d0] sm:$0xff] %vm1067_vm0, %v837_v52  ;;  %v157_v52 = vld [vmem:[%s4960_s0 + $0x490] sm:$0xff]  ;;  %v860_v57 = vadd.f32 %v508_v50, %v156_v49  ;;  %v528_v46 = vld [vmem:[%s4961_s1 + $0x528] sm:$0x3f] }
  0x80   :  { %1192 = vst.msk [vmem:[%s4962_s2 + $0x3d8] sm:$0x3f] %vm1069_vm1, %v838_v55  ;;  %v158_v55 = vld [vmem:[%s4960_s0 + $0x498] sm:$0x3f]  ;;  %v861_v60 = vadd.f32 %v509_v53, %v157_v52  ;;  %v529_v49 = vld [vmem:[%s4961_s1 + $0x530] sm:$0xff] }
  0x81   :  { %1193 = vst.msk [vmem:[%s4962_s2 + $0x3e0] sm:$0xff] %vm1067_vm0, %v839_v58  ;;  %v159_v58 = vld [vmem:[%s4960_s0 + $0x4a0] sm:$0xff]  ;;  %v862_v63 = vadd.f32 %v510_v56, %v158_v55  ;;  %v530_v52 = vld [vmem:[%s4961_s1 + $0x538] sm:$0x3f] }
  0x82   :  { %1194 = vst.msk [vmem:[%s4962_s2 + $0x3e8] sm:$0x3f] %vm1069_vm1, %v840_v61  ;;  %v160_v61 = vld [vmem:[%s4960_s0 + $0x4a8] sm:$0x3f]  ;;  %v863_v2 = vadd.f32 %v511_v59, %v159_v58  ;;  %v531_v55 = vld [vmem:[%s4961_s1 + $0x540] sm:$0xff] }
  0x83   :  { %1195 = vst.msk [vmem:[%s4962_s2 + $0x3f0] sm:$0xff] %vm1067_vm0, %v841_v0  ;;  %v161_v0 = vld [vmem:[%s4960_s0 + $0x4b0] sm:$0xff]  ;;  %v864_v5 = vadd.f32 %v512_v62, %v160_v61  ;;  %v532_v58 = vld [vmem:[%s4961_s1 + $0x548] sm:$0x3f] }
  0x84   :  { %1196 = vst.msk [vmem:[%s4962_s2 + $0x3f8] sm:$0x3f] %vm1069_vm1, %v842_v3  ;;  %v162_v3 = vld [vmem:[%s4960_s0 + $0x4b8] sm:$0x3f]  ;;  %v865_v8 = vadd.f32 %v513_v1, %v161_v0  ;;  %v533_v61 = vld [vmem:[%s4961_s1 + $0x550] sm:$0xff] }
  0x85   :  { %1197 = vst.msk [vmem:[%s4962_s2 + $0x400] sm:$0xff] %vm1067_vm0, %v843_v6  ;;  %v163_v6 = vld [vmem:[%s4960_s0 + $0x4c0] sm:$0xff]  ;;  %v866_v11 = vadd.f32 %v514_v4, %v162_v3  ;;  %v534_v0 = vld [vmem:[%s4961_s1 + $0x558] sm:$0x3f] }
  0x86   :  { %1198 = vst.msk [vmem:[%s4962_s2 + $0x408] sm:$0x3f] %vm1069_vm1, %v844_v9  ;;  %v164_v9 = vld [vmem:[%s4960_s0 + $0x4c8] sm:$0x3f]  ;;  %v867_v14 = vadd.f32 %v515_v7, %v163_v6  ;;  %v535_v3 = vld [vmem:[%s4961_s1 + $0x560] sm:$0xff] }
  0x87   :  { %1199 = vst.msk [vmem:[%s4962_s2 + $0x410] sm:$0xff] %vm1067_vm0, %v845_v12  ;;  %v165_v12 = vld [vmem:[%s4960_s0 + $0x4d0] sm:$0xff]  ;;  %v868_v17 = vadd.f32 %v516_v10, %v164_v9  ;;  %v536_v6 = vld [vmem:[%s4961_s1 + $0x568] sm:$0x3f] }
  0x88   :  { %1200 = vst.msk [vmem:[%s4962_s2 + $0x418] sm:$0x3f] %vm1069_vm1, %v846_v15  ;;  %v166_v15 = vld [vmem:[%s4960_s0 + $0x4d8] sm:$0x3f]  ;;  %v869_v20 = vadd.f32 %v517_v13, %v165_v12  ;;  %v537_v9 = vld [vmem:[%s4961_s1 + $0x570] sm:$0xff] }
  0x89   :  { %1201 = vst.msk [vmem:[%s4962_s2 + $0x420] sm:$0xff] %vm1067_vm0, %v847_v18  ;;  %v167_v18 = vld [vmem:[%s4960_s0 + $0x4e0] sm:$0xff]  ;;  %v870_v23 = vadd.f32 %v518_v16, %v166_v15  ;;  %v538_v12 = vld [vmem:[%s4961_s1 + $0x578] sm:$0x3f] }
  0x8a   :  { %1202 = vst.msk [vmem:[%s4962_s2 + $0x428] sm:$0x3f] %vm1069_vm1, %v848_v21  ;;  %v168_v21 = vld [vmem:[%s4960_s0 + $0x4e8] sm:$0x3f]  ;;  %v871_v26 = vadd.f32 %v519_v19, %v167_v18  ;;  %v539_v15 = vld [vmem:[%s4961_s1 + $0x580] sm:$0xff] }
  0x8b   :  { %1203 = vst.msk [vmem:[%s4962_s2 + $0x430] sm:$0xff] %vm1067_vm0, %v849_v24  ;;  %v169_v24 = vld [vmem:[%s4960_s0 + $0x4f0] sm:$0xff]  ;;  %v872_v29 = vadd.f32 %v520_v22, %v168_v21  ;;  %v540_v18 = vld [vmem:[%s4961_s1 + $0x588] sm:$0x3f] }
  0x8c   :  { %1204 = vst.msk [vmem:[%s4962_s2 + $0x438] sm:$0x3f] %vm1069_vm1, %v850_v27  ;;  %v170_v27 = vld [vmem:[%s4960_s0 + $0x4f8] sm:$0x3f]  ;;  %v873_v32 = vadd.f32 %v521_v25, %v169_v24  ;;  %v541_v21 = vld [vmem:[%s4961_s1 + $0x590] sm:$0xff] }
  0x8d   :  { %1205 = vst.msk [vmem:[%s4962_s2 + $0x440] sm:$0xff] %vm1067_vm0, %v851_v30  ;;  %v171_v30 = vld [vmem:[%s4960_s0 + $0x500] sm:$0xff]  ;;  %v874_v35 = vadd.f32 %v522_v28, %v170_v27  ;;  %v542_v24 = vld [vmem:[%s4961_s1 + $0x598] sm:$0x3f] }
  0x8e   :  { %1206 = vst.msk [vmem:[%s4962_s2 + $0x448] sm:$0x3f] %vm1069_vm1, %v852_v33  ;;  %v172_v33 = vld [vmem:[%s4960_s0 + $0x508] sm:$0x3f]  ;;  %v875_v38 = vadd.f32 %v523_v31, %v171_v30  ;;  %v543_v27 = vld [vmem:[%s4961_s1 + $0x5a0] sm:$0xff] }
  0x8f   :  { %1207 = vst.msk [vmem:[%s4962_s2 + $0x450] sm:$0xff] %vm1067_vm0, %v853_v36  ;;  %v173_v36 = vld [vmem:[%s4960_s0 + $0x510] sm:$0xff]  ;;  %v876_v41 = vadd.f32 %v524_v34, %v172_v33  ;;  %v544_v30 = vld [vmem:[%s4961_s1 + $0x5a8] sm:$0x3f] }
  0x90   :  { %1208 = vst.msk [vmem:[%s4962_s2 + $0x458] sm:$0x3f] %vm1069_vm1, %v854_v39  ;;  %v174_v39 = vld [vmem:[%s4960_s0 + $0x518] sm:$0x3f]  ;;  %v877_v44 = vadd.f32 %v525_v37, %v173_v36  ;;  %v545_v33 = vld [vmem:[%s4961_s1 + $0x5b0] sm:$0xff] }
  0x91   :  { %1209 = vst.msk [vmem:[%s4962_s2 + $0x460] sm:$0xff] %vm1067_vm0, %v855_v42  ;;  %v175_v42 = vld [vmem:[%s4960_s0 + $0x520] sm:$0xff]  ;;  %v878_v47 = vadd.f32 %v526_v40, %v174_v39  ;;  %v546_v36 = vld [vmem:[%s4961_s1 + $0x5b8] sm:$0x3f] }
  0x92   :  { %1210 = vst.msk [vmem:[%s4962_s2 + $0x468] sm:$0x3f] %vm1069_vm1, %v856_v45  ;;  %v176_v45 = vld [vmem:[%s4960_s0 + $0x528] sm:$0x3f]  ;;  %v879_v50 = vadd.f32 %v527_v43, %v175_v42  ;;  %v547_v39 = vld [vmem:[%s4961_s1 + $0x5c0] sm:$0xff] }
  0x93   :  { %1211 = vst.msk [vmem:[%s4962_s2 + $0x470] sm:$0xff] %vm1067_vm0, %v857_v48  ;;  %v177_v48 = vld [vmem:[%s4960_s0 + $0x530] sm:$0xff]  ;;  %v880_v53 = vadd.f32 %v528_v46, %v176_v45  ;;  %v548_v42 = vld [vmem:[%s4961_s1 + $0x5c8] sm:$0x3f] }
  0x94   :  { %1212 = vst.msk [vmem:[%s4962_s2 + $0x478] sm:$0x3f] %vm1069_vm1, %v858_v51  ;;  %v178_v51 = vld [vmem:[%s4960_s0 + $0x538] sm:$0x3f]  ;;  %v881_v56 = vadd.f32 %v529_v49, %v177_v48  ;;  %v549_v45 = vld [vmem:[%s4961_s1 + $0x5d0] sm:$0xff] }
  0x95   :  { %1213 = vst.msk [vmem:[%s4962_s2 + $0x480] sm:$0xff] %vm1067_vm0, %v859_v54  ;;  %v179_v54 = vld [vmem:[%s4960_s0 + $0x540] sm:$0xff]  ;;  %v882_v59 = vadd.f32 %v530_v52, %v178_v51  ;;  %v550_v48 = vld [vmem:[%s4961_s1 + $0x5d8] sm:$0x3f] }
  0x96   :  { %1214 = vst.msk [vmem:[%s4962_s2 + $0x488] sm:$0x3f] %vm1069_vm1, %v860_v57  ;;  %v180_v57 = vld [vmem:[%s4960_s0 + $0x548] sm:$0x3f]  ;;  %v883_v62 = vadd.f32 %v531_v55, %v179_v54  ;;  %v551_v51 = vld [vmem:[%s4961_s1 + $0x5e0] sm:$0xff] }
  0x97   :  { %1215 = vst.msk [vmem:[%s4962_s2 + $0x490] sm:$0xff] %vm1067_vm0, %v861_v60  ;;  %v181_v60 = vld [vmem:[%s4960_s0 + $0x550] sm:$0xff]  ;;  %v884_v1 = vadd.f32 %v532_v58, %v180_v57  ;;  %v552_v54 = vld [vmem:[%s4961_s1 + $0x5e8] sm:$0x3f] }
  0x98   :  { %1216 = vst.msk [vmem:[%s4962_s2 + $0x498] sm:$0x3f] %vm1069_vm1, %v862_v63  ;;  %v182_v63 = vld [vmem:[%s4960_s0 + $0x558] sm:$0x3f]  ;;  %v885_v4 = vadd.f32 %v533_v61, %v181_v60  ;;  %v553_v57 = vld [vmem:[%s4961_s1 + $0x5f0] sm:$0xff] }
  0x99   :  { %1217 = vst.msk [vmem:[%s4962_s2 + $0x4a0] sm:$0xff] %vm1067_vm0, %v863_v2  ;;  %v183_v2 = vld [vmem:[%s4960_s0 + $0x560] sm:$0xff]  ;;  %v886_v7 = vadd.f32 %v534_v0, %v182_v63  ;;  %v554_v60 = vld [vmem:[%s4961_s1 + $0x5f8] sm:$0x3f] }
  0x9a   :  { %1218 = vst.msk [vmem:[%s4962_s2 + $0x4a8] sm:$0x3f] %vm1069_vm1, %v864_v5  ;;  %v184_v5 = vld [vmem:[%s4960_s0 + $0x568] sm:$0x3f]  ;;  %v887_v10 = vadd.f32 %v535_v3, %v183_v2  ;;  %v555_v63 = vld [vmem:[%s4961_s1 + $0x600] sm:$0xff] }
  0x9b   :  { %1219 = vst.msk [vmem:[%s4962_s2 + $0x4b0] sm:$0xff] %vm1067_vm0, %v865_v8  ;;  %v185_v8 = vld [vmem:[%s4960_s0 + $0x570] sm:$0xff]  ;;  %v888_v13 = vadd.f32 %v536_v6, %v184_v5  ;;  %v556_v2 = vld [vmem:[%s4961_s1 + $0x608] sm:$0x3f] }
  0x9c   :  { %1220 = vst.msk [vmem:[%s4962_s2 + $0x4b8] sm:$0x3f] %vm1069_vm1, %v866_v11  ;;  %v186_v11 = vld [vmem:[%s4960_s0 + $0x578] sm:$0x3f]  ;;  %v889_v16 = vadd.f32 %v537_v9, %v185_v8  ;;  %v557_v5 = vld [vmem:[%s4961_s1 + $0x610] sm:$0xff] }
  0x9d   :  { %1221 = vst.msk [vmem:[%s4962_s2 + $0x4c0] sm:$0xff] %vm1067_vm0, %v867_v14  ;;  %v187_v14 = vld [vmem:[%s4960_s0 + $0x580] sm:$0xff]  ;;  %v890_v19 = vadd.f32 %v538_v12, %v186_v11  ;;  %v558_v8 = vld [vmem:[%s4961_s1 + $0x618] sm:$0x3f] }
  0x9e   :  { %1222 = vst.msk [vmem:[%s4962_s2 + $0x4c8] sm:$0x3f] %vm1069_vm1, %v868_v17  ;;  %v188_v17 = vld [vmem:[%s4960_s0 + $0x588] sm:$0x3f]  ;;  %v891_v22 = vadd.f32 %v539_v15, %v187_v14  ;;  %v559_v11 = vld [vmem:[%s4961_s1 + $0x620] sm:$0xff] }
  0x9f   :  { %1223 = vst.msk [vmem:[%s4962_s2 + $0x4d0] sm:$0xff] %vm1067_vm0, %v869_v20  ;;  %v189_v20 = vld [vmem:[%s4960_s0 + $0x590] sm:$0xff]  ;;  %v892_v25 = vadd.f32 %v540_v18, %v188_v17  ;;  %v560_v14 = vld [vmem:[%s4961_s1 + $0x628] sm:$0x3f] }
  0xa0   :  { %1224 = vst.msk [vmem:[%s4962_s2 + $0x4d8] sm:$0x3f] %vm1069_vm1, %v870_v23  ;;  %v190_v23 = vld [vmem:[%s4960_s0 + $0x598] sm:$0x3f]  ;;  %v893_v28 = vadd.f32 %v541_v21, %v189_v20  ;;  %v561_v17 = vld [vmem:[%s4961_s1 + $0x630] sm:$0xff] }
  0xa1   :  { %1225 = vst.msk [vmem:[%s4962_s2 + $0x4e0] sm:$0xff] %vm1067_vm0, %v871_v26  ;;  %v191_v26 = vld [vmem:[%s4960_s0 + $0x5a0] sm:$0xff]  ;;  %v894_v31 = vadd.f32 %v542_v24, %v190_v23  ;;  %v562_v20 = vld [vmem:[%s4961_s1 + $0x638] sm:$0x3f] }
  0xa2   :  { %1226 = vst.msk [vmem:[%s4962_s2 + $0x4e8] sm:$0x3f] %vm1069_vm1, %v872_v29  ;;  %v192_v29 = vld [vmem:[%s4960_s0 + $0x5a8] sm:$0x3f]  ;;  %v895_v34 = vadd.f32 %v543_v27, %v191_v26  ;;  %v563_v23 = vld [vmem:[%s4961_s1 + $0x640] sm:$0xff] }
  0xa3   :  { %1227 = vst.msk [vmem:[%s4962_s2 + $0x4f0] sm:$0xff] %vm1067_vm0, %v873_v32  ;;  %v193_v32 = vld [vmem:[%s4960_s0 + $0x5b0] sm:$0xff]  ;;  %v896_v37 = vadd.f32 %v544_v30, %v192_v29  ;;  %v564_v26 = vld [vmem:[%s4961_s1 + $0x648] sm:$0x3f] }
  0xa4   :  { %1228 = vst.msk [vmem:[%s4962_s2 + $0x4f8] sm:$0x3f] %vm1069_vm1, %v874_v35  ;;  %v194_v35 = vld [vmem:[%s4960_s0 + $0x5b8] sm:$0x3f]  ;;  %v897_v40 = vadd.f32 %v545_v33, %v193_v32  ;;  %v565_v29 = vld [vmem:[%s4961_s1 + $0x650] sm:$0xff] }
  0xa5   :  { %1229 = vst.msk [vmem:[%s4962_s2 + $0x500] sm:$0xff] %vm1067_vm0, %v875_v38  ;;  %v195_v38 = vld [vmem:[%s4960_s0 + $0x5c0] sm:$0xff]  ;;  %v898_v43 = vadd.f32 %v546_v36, %v194_v35  ;;  %v566_v32 = vld [vmem:[%s4961_s1 + $0x658] sm:$0x3f] }
  0xa6   :  { %1230 = vst.msk [vmem:[%s4962_s2 + $0x508] sm:$0x3f] %vm1069_vm1, %v876_v41  ;;  %v196_v41 = vld [vmem:[%s4960_s0 + $0x5c8] sm:$0x3f]  ;;  %v899_v46 = vadd.f32 %v547_v39, %v195_v38  ;;  %v567_v35 = vld [vmem:[%s4961_s1 + $0x660] sm:$0xff] }
  0xa7   :  { %1231 = vst.msk [vmem:[%s4962_s2 + $0x510] sm:$0xff] %vm1067_vm0, %v877_v44  ;;  %v197_v44 = vld [vmem:[%s4960_s0 + $0x5d0] sm:$0xff]  ;;  %v900_v49 = vadd.f32 %v548_v42, %v196_v41  ;;  %v568_v38 = vld [vmem:[%s4961_s1 + $0x668] sm:$0x3f] }
  0xa8   :  { %1232 = vst.msk [vmem:[%s4962_s2 + $0x518] sm:$0x3f] %vm1069_vm1, %v878_v47  ;;  %v198_v47 = vld [vmem:[%s4960_s0 + $0x5d8] sm:$0x3f]  ;;  %v901_v52 = vadd.f32 %v549_v45, %v197_v44  ;;  %v569_v41 = vld [vmem:[%s4961_s1 + $0x670] sm:$0xff] }
  0xa9   :  { %1233 = vst.msk [vmem:[%s4962_s2 + $0x520] sm:$0xff] %vm1067_vm0, %v879_v50  ;;  %v199_v50 = vld [vmem:[%s4960_s0 + $0x5e0] sm:$0xff]  ;;  %v902_v55 = vadd.f32 %v550_v48, %v198_v47  ;;  %v570_v44 = vld [vmem:[%s4961_s1 + $0x678] sm:$0x3f] }
  0xaa   :  { %1234 = vst.msk [vmem:[%s4962_s2 + $0x528] sm:$0x3f] %vm1069_vm1, %v880_v53  ;;  %v200_v53 = vld [vmem:[%s4960_s0 + $0x5e8] sm:$0x3f]  ;;  %v903_v58 = vadd.f32 %v551_v51, %v199_v50  ;;  %v571_v47 = vld [vmem:[%s4961_s1 + $0x680] sm:$0xff] }
  0xab   :  { %1235 = vst.msk [vmem:[%s4962_s2 + $0x530] sm:$0xff] %vm1067_vm0, %v881_v56  ;;  %v201_v56 = vld [vmem:[%s4960_s0 + $0x5f0] sm:$0xff]  ;;  %v904_v61 = vadd.f32 %v552_v54, %v200_v53  ;;  %v572_v50 = vld [vmem:[%s4961_s1 + $0x688] sm:$0x3f] }
  0xac   :  { %1236 = vst.msk [vmem:[%s4962_s2 + $0x538] sm:$0x3f] %vm1069_vm1, %v882_v59  ;;  %v202_v59 = vld [vmem:[%s4960_s0 + $0x5f8] sm:$0x3f]  ;;  %v905_v0 = vadd.f32 %v553_v57, %v201_v56  ;;  %v573_v53 = vld [vmem:[%s4961_s1 + $0x690] sm:$0xff] }
  0xad   :  { %1237 = vst.msk [vmem:[%s4962_s2 + $0x540] sm:$0xff] %vm1067_vm0, %v883_v62  ;;  %v203_v62 = vld [vmem:[%s4960_s0 + $0x600] sm:$0xff]  ;;  %v906_v3 = vadd.f32 %v554_v60, %v202_v59  ;;  %v574_v56 = vld [vmem:[%s4961_s1 + $0x698] sm:$0x3f] }
  0xae   :  { %1238 = vst.msk [vmem:[%s4962_s2 + $0x548] sm:$0x3f] %vm1069_vm1, %v884_v1  ;;  %v204_v1 = vld [vmem:[%s4960_s0 + $0x608] sm:$0x3f]  ;;  %v907_v6 = vadd.f32 %v555_v63, %v203_v62  ;;  %v575_v59 = vld [vmem:[%s4961_s1 + $0x6a0] sm:$0xff] }
  0xaf   :  { %1239 = vst.msk [vmem:[%s4962_s2 + $0x550] sm:$0xff] %vm1067_vm0, %v885_v4  ;;  %v205_v4 = vld [vmem:[%s4960_s0 + $0x610] sm:$0xff]  ;;  %v908_v9 = vadd.f32 %v556_v2, %v204_v1  ;;  %v576_v62 = vld [vmem:[%s4961_s1 + $0x6a8] sm:$0x3f] }
  0xb0   :  { %1240 = vst.msk [vmem:[%s4962_s2 + $0x558] sm:$0x3f] %vm1069_vm1, %v886_v7  ;;  %v206_v7 = vld [vmem:[%s4960_s0 + $0x618] sm:$0x3f]  ;;  %v909_v12 = vadd.f32 %v557_v5, %v205_v4  ;;  %v577_v1 = vld [vmem:[%s4961_s1 + $0x6b0] sm:$0xff] }
  0xb1   :  { %1241 = vst.msk [vmem:[%s4962_s2 + $0x560] sm:$0xff] %vm1067_vm0, %v887_v10  ;;  %v207_v10 = vld [vmem:[%s4960_s0 + $0x620] sm:$0xff]  ;;  %v910_v15 = vadd.f32 %v558_v8, %v206_v7  ;;  %v578_v4 = vld [vmem:[%s4961_s1 + $0x6b8] sm:$0x3f] }
  0xb2   :  { %1242 = vst.msk [vmem:[%s4962_s2 + $0x568] sm:$0x3f] %vm1069_vm1, %v888_v13  ;;  %v208_v13 = vld [vmem:[%s4960_s0 + $0x628] sm:$0x3f]  ;;  %v911_v18 = vadd.f32 %v559_v11, %v207_v10  ;;  %v579_v7 = vld [vmem:[%s4961_s1 + $0x6c0] sm:$0xff] }
  0xb3   :  { %1243 = vst.msk [vmem:[%s4962_s2 + $0x570] sm:$0xff] %vm1067_vm0, %v889_v16  ;;  %v209_v16 = vld [vmem:[%s4960_s0 + $0x630] sm:$0xff]  ;;  %v912_v21 = vadd.f32 %v560_v14, %v208_v13  ;;  %v580_v10 = vld [vmem:[%s4961_s1 + $0x6c8] sm:$0x3f] }
  0xb4   :  { %1244 = vst.msk [vmem:[%s4962_s2 + $0x578] sm:$0x3f] %vm1069_vm1, %v890_v19  ;;  %v210_v19 = vld [vmem:[%s4960_s0 + $0x638] sm:$0x3f]  ;;  %v913_v24 = vadd.f32 %v561_v17, %v209_v16  ;;  %v581_v13 = vld [vmem:[%s4961_s1 + $0x6d0] sm:$0xff] }
  0xb5   :  { %1245 = vst.msk [vmem:[%s4962_s2 + $0x580] sm:$0xff] %vm1067_vm0, %v891_v22  ;;  %v211_v22 = vld [vmem:[%s4960_s0 + $0x640] sm:$0xff]  ;;  %v914_v27 = vadd.f32 %v562_v20, %v210_v19  ;;  %v582_v16 = vld [vmem:[%s4961_s1 + $0x6d8] sm:$0x3f] }
  0xb6   :  { %1246 = vst.msk [vmem:[%s4962_s2 + $0x588] sm:$0x3f] %vm1069_vm1, %v892_v25  ;;  %v212_v25 = vld [vmem:[%s4960_s0 + $0x648] sm:$0x3f]  ;;  %v915_v30 = vadd.f32 %v563_v23, %v211_v22  ;;  %v583_v19 = vld [vmem:[%s4961_s1 + $0x6e0] sm:$0xff] }
  0xb7   :  { %1247 = vst.msk [vmem:[%s4962_s2 + $0x590] sm:$0xff] %vm1067_vm0, %v893_v28  ;;  %v213_v28 = vld [vmem:[%s4960_s0 + $0x650] sm:$0xff]  ;;  %v916_v33 = vadd.f32 %v564_v26, %v212_v25  ;;  %v584_v22 = vld [vmem:[%s4961_s1 + $0x6e8] sm:$0x3f] }
  0xb8   :  { %1248 = vst.msk [vmem:[%s4962_s2 + $0x598] sm:$0x3f] %vm1069_vm1, %v894_v31  ;;  %v214_v31 = vld [vmem:[%s4960_s0 + $0x658] sm:$0x3f]  ;;  %v917_v36 = vadd.f32 %v565_v29, %v213_v28  ;;  %v585_v25 = vld [vmem:[%s4961_s1 + $0x6f0] sm:$0xff] }
  0xb9   :  { %1249 = vst.msk [vmem:[%s4962_s2 + $0x5a0] sm:$0xff] %vm1067_vm0, %v895_v34  ;;  %v215_v34 = vld [vmem:[%s4960_s0 + $0x660] sm:$0xff]  ;;  %v918_v39 = vadd.f32 %v566_v32, %v214_v31  ;;  %v586_v28 = vld [vmem:[%s4961_s1 + $0x6f8] sm:$0x3f] }
  0xba   :  { %1250 = vst.msk [vmem:[%s4962_s2 + $0x5a8] sm:$0x3f] %vm1069_vm1, %v896_v37  ;;  %v216_v37 = vld [vmem:[%s4960_s0 + $0x668] sm:$0x3f]  ;;  %v919_v42 = vadd.f32 %v567_v35, %v215_v34  ;;  %v587_v31 = vld [vmem:[%s4961_s1 + $0x700] sm:$0xff] }
  0xbb   :  { %1251 = vst.msk [vmem:[%s4962_s2 + $0x5b0] sm:$0xff] %vm1067_vm0, %v897_v40  ;;  %v217_v40 = vld [vmem:[%s4960_s0 + $0x670] sm:$0xff]  ;;  %v920_v45 = vadd.f32 %v568_v38, %v216_v37  ;;  %v588_v34 = vld [vmem:[%s4961_s1 + $0x708] sm:$0x3f] }
  0xbc   :  { %1252 = vst.msk [vmem:[%s4962_s2 + $0x5b8] sm:$0x3f] %vm1069_vm1, %v898_v43  ;;  %v218_v43 = vld [vmem:[%s4960_s0 + $0x678] sm:$0x3f]  ;;  %v921_v48 = vadd.f32 %v569_v41, %v217_v40  ;;  %v589_v37 = vld [vmem:[%s4961_s1 + $0x710] sm:$0xff] }
  0xbd   :  { %1253 = vst.msk [vmem:[%s4962_s2 + $0x5c0] sm:$0xff] %vm1067_vm0, %v899_v46  ;;  %v219_v46 = vld [vmem:[%s4960_s0 + $0x680] sm:$0xff]  ;;  %v922_v51 = vadd.f32 %v570_v44, %v218_v43  ;;  %v590_v40 = vld [vmem:[%s4961_s1 + $0x718] sm:$0x3f] }
  0xbe   :  { %1254 = vst.msk [vmem:[%s4962_s2 + $0x5c8] sm:$0x3f] %vm1069_vm1, %v900_v49  ;;  %v220_v49 = vld [vmem:[%s4960_s0 + $0x688] sm:$0x3f]  ;;  %v923_v54 = vadd.f32 %v571_v47, %v219_v46  ;;  %v591_v43 = vld [vmem:[%s4961_s1 + $0x720] sm:$0xff] }
  0xbf   :  { %1255 = vst.msk [vmem:[%s4962_s2 + $0x5d0] sm:$0xff] %vm1067_vm0, %v901_v52  ;;  %v221_v52 = vld [vmem:[%s4960_s0 + $0x690] sm:$0xff]  ;;  %v924_v57 = vadd.f32 %v572_v50, %v220_v49  ;;  %v592_v46 = vld [vmem:[%s4961_s1 + $0x728] sm:$0x3f] }
  0xc0   :  { %1256 = vst.msk [vmem:[%s4962_s2 + $0x5d8] sm:$0x3f] %vm1069_vm1, %v902_v55  ;;  %v222_v55 = vld [vmem:[%s4960_s0 + $0x698] sm:$0x3f]  ;;  %v925_v60 = vadd.f32 %v573_v53, %v221_v52  ;;  %v593_v49 = vld [vmem:[%s4961_s1 + $0x730] sm:$0xff] }
  0xc1   :  { %1257 = vst.msk [vmem:[%s4962_s2 + $0x5e0] sm:$0xff] %vm1067_vm0, %v903_v58  ;;  %v223_v58 = vld [vmem:[%s4960_s0 + $0x6a0] sm:$0xff]  ;;  %v926_v63 = vadd.f32 %v574_v56, %v222_v55  ;;  %v594_v52 = vld [vmem:[%s4961_s1 + $0x738] sm:$0x3f] }
  0xc2   :  { %1258 = vst.msk [vmem:[%s4962_s2 + $0x5e8] sm:$0x3f] %vm1069_vm1, %v904_v61  ;;  %v224_v61 = vld [vmem:[%s4960_s0 + $0x6a8] sm:$0x3f]  ;;  %v927_v2 = vadd.f32 %v575_v59, %v223_v58  ;;  %v595_v55 = vld [vmem:[%s4961_s1 + $0x740] sm:$0xff] }
  0xc3   :  { %1259 = vst.msk [vmem:[%s4962_s2 + $0x5f0] sm:$0xff] %vm1067_vm0, %v905_v0  ;;  %v225_v0 = vld [vmem:[%s4960_s0 + $0x6b0] sm:$0xff]  ;;  %v928_v5 = vadd.f32 %v576_v62, %v224_v61  ;;  %v596_v58 = vld [vmem:[%s4961_s1 + $0x748] sm:$0x3f] }
  0xc4   :  { %1260 = vst.msk [vmem:[%s4962_s2 + $0x5f8] sm:$0x3f] %vm1069_vm1, %v906_v3  ;;  %v226_v3 = vld [vmem:[%s4960_s0 + $0x6b8] sm:$0x3f]  ;;  %v929_v8 = vadd.f32 %v577_v1, %v225_v0  ;;  %v597_v61 = vld [vmem:[%s4961_s1 + $0x750] sm:$0xff] }
  0xc5   :  { %1261 = vst.msk [vmem:[%s4962_s2 + $0x600] sm:$0xff] %vm1067_vm0, %v907_v6  ;;  %v227_v6 = vld [vmem:[%s4960_s0 + $0x6c0] sm:$0xff]  ;;  %v930_v11 = vadd.f32 %v578_v4, %v226_v3  ;;  %v598_v0 = vld [vmem:[%s4961_s1 + $0x758] sm:$0x3f] }
  0xc6   :  { %1262 = vst.msk [vmem:[%s4962_s2 + $0x608] sm:$0x3f] %vm1069_vm1, %v908_v9  ;;  %v228_v9 = vld [vmem:[%s4960_s0 + $0x6c8] sm:$0x3f]  ;;  %v931_v14 = vadd.f32 %v579_v7, %v227_v6  ;;  %v599_v3 = vld [vmem:[%s4961_s1 + $0x760] sm:$0xff] }
  0xc7   :  { %1263 = vst.msk [vmem:[%s4962_s2 + $0x610] sm:$0xff] %vm1067_vm0, %v909_v12  ;;  %v229_v12 = vld [vmem:[%s4960_s0 + $0x6d0] sm:$0xff]  ;;  %v932_v17 = vadd.f32 %v580_v10, %v228_v9  ;;  %v600_v6 = vld [vmem:[%s4961_s1 + $0x768] sm:$0x3f] }
  0xc8   :  { %1264 = vst.msk [vmem:[%s4962_s2 + $0x618] sm:$0x3f] %vm1069_vm1, %v910_v15  ;;  %v230_v15 = vld [vmem:[%s4960_s0 + $0x6d8] sm:$0x3f]  ;;  %v933_v20 = vadd.f32 %v581_v13, %v229_v12  ;;  %v601_v9 = vld [vmem:[%s4961_s1 + $0x770] sm:$0xff] }
  0xc9   :  { %1265 = vst.msk [vmem:[%s4962_s2 + $0x620] sm:$0xff] %vm1067_vm0, %v911_v18  ;;  %v231_v18 = vld [vmem:[%s4960_s0 + $0x6e0] sm:$0xff]  ;;  %v934_v23 = vadd.f32 %v582_v16, %v230_v15  ;;  %v602_v12 = vld [vmem:[%s4961_s1 + $0x778] sm:$0x3f] }
  0xca   :  { %1266 = vst.msk [vmem:[%s4962_s2 + $0x628] sm:$0x3f] %vm1069_vm1, %v912_v21  ;;  %v232_v21 = vld [vmem:[%s4960_s0 + $0x6e8] sm:$0x3f]  ;;  %v935_v26 = vadd.f32 %v583_v19, %v231_v18  ;;  %v603_v15 = vld [vmem:[%s4961_s1 + $0x780] sm:$0xff] }
  0xcb   :  { %1267 = vst.msk [vmem:[%s4962_s2 + $0x630] sm:$0xff] %vm1067_vm0, %v913_v24  ;;  %v233_v24 = vld [vmem:[%s4960_s0 + $0x6f0] sm:$0xff]  ;;  %v936_v29 = vadd.f32 %v584_v22, %v232_v21  ;;  %v604_v18 = vld [vmem:[%s4961_s1 + $0x788] sm:$0x3f] }
  0xcc   :  { %1268 = vst.msk [vmem:[%s4962_s2 + $0x638] sm:$0x3f] %vm1069_vm1, %v914_v27  ;;  %v234_v27 = vld [vmem:[%s4960_s0 + $0x6f8] sm:$0x3f]  ;;  %v937_v32 = vadd.f32 %v585_v25, %v233_v24  ;;  %v605_v21 = vld [vmem:[%s4961_s1 + $0x790] sm:$0xff] }
  0xcd   :  { %1269 = vst.msk [vmem:[%s4962_s2 + $0x640] sm:$0xff] %vm1067_vm0, %v915_v30  ;;  %v235_v30 = vld [vmem:[%s4960_s0 + $0x700] sm:$0xff]  ;;  %v938_v35 = vadd.f32 %v586_v28, %v234_v27  ;;  %v606_v24 = vld [vmem:[%s4961_s1 + $0x798] sm:$0x3f] }
  0xce   :  { %1270 = vst.msk [vmem:[%s4962_s2 + $0x648] sm:$0x3f] %vm1069_vm1, %v916_v33  ;;  %v236_v33 = vld [vmem:[%s4960_s0 + $0x708] sm:$0x3f]  ;;  %v939_v38 = vadd.f32 %v587_v31, %v235_v30  ;;  %v607_v27 = vld [vmem:[%s4961_s1 + $0x7a0] sm:$0xff] }
  0xcf   :  { %1271 = vst.msk [vmem:[%s4962_s2 + $0x650] sm:$0xff] %vm1067_vm0, %v917_v36  ;;  %v237_v36 = vld [vmem:[%s4960_s0 + $0x710] sm:$0xff]  ;;  %v940_v41 = vadd.f32 %v588_v34, %v236_v33  ;;  %v608_v30 = vld [vmem:[%s4961_s1 + $0x7a8] sm:$0x3f] }
  0xd0   :  { %1272 = vst.msk [vmem:[%s4962_s2 + $0x658] sm:$0x3f] %vm1069_vm1, %v918_v39  ;;  %v238_v39 = vld [vmem:[%s4960_s0 + $0x718] sm:$0x3f]  ;;  %v941_v44 = vadd.f32 %v589_v37, %v237_v36  ;;  %v609_v33 = vld [vmem:[%s4961_s1 + $0x7b0] sm:$0xff] }
  0xd1   :  { %1273 = vst.msk [vmem:[%s4962_s2 + $0x660] sm:$0xff] %vm1067_vm0, %v919_v42  ;;  %v239_v42 = vld [vmem:[%s4960_s0 + $0x720] sm:$0xff]  ;;  %v942_v47 = vadd.f32 %v590_v40, %v238_v39  ;;  %v610_v36 = vld [vmem:[%s4961_s1 + $0x7b8] sm:$0x3f] }
  0xd2   :  { %1274 = vst.msk [vmem:[%s4962_s2 + $0x668] sm:$0x3f] %vm1069_vm1, %v920_v45  ;;  %v240_v45 = vld [vmem:[%s4960_s0 + $0x728] sm:$0x3f]  ;;  %v943_v50 = vadd.f32 %v591_v43, %v239_v42  ;;  %v611_v39 = vld [vmem:[%s4961_s1 + $0x7c0] sm:$0xff] }
  0xd3   :  { %1275 = vst.msk [vmem:[%s4962_s2 + $0x670] sm:$0xff] %vm1067_vm0, %v921_v48  ;;  %v241_v48 = vld [vmem:[%s4960_s0 + $0x730] sm:$0xff]  ;;  %v944_v53 = vadd.f32 %v592_v46, %v240_v45  ;;  %v612_v42 = vld [vmem:[%s4961_s1 + $0x7c8] sm:$0x3f] }
  0xd4   :  { %1276 = vst.msk [vmem:[%s4962_s2 + $0x678] sm:$0x3f] %vm1069_vm1, %v922_v51  ;;  %v242_v51 = vld [vmem:[%s4960_s0 + $0x738] sm:$0x3f]  ;;  %v945_v56 = vadd.f32 %v593_v49, %v241_v48  ;;  %v613_v45 = vld [vmem:[%s4961_s1 + $0x7d0] sm:$0xff] }
  0xd5   :  { %1277 = vst.msk [vmem:[%s4962_s2 + $0x680] sm:$0xff] %vm1067_vm0, %v923_v54  ;;  %v243_v54 = vld [vmem:[%s4960_s0 + $0x740] sm:$0xff]  ;;  %v946_v59 = vadd.f32 %v594_v52, %v242_v51  ;;  %v614_v48 = vld [vmem:[%s4961_s1 + $0x7d8] sm:$0x3f] }
  0xd6   :  { %1278 = vst.msk [vmem:[%s4962_s2 + $0x688] sm:$0x3f] %vm1069_vm1, %v924_v57  ;;  %v244_v57 = vld [vmem:[%s4960_s0 + $0x748] sm:$0x3f]  ;;  %v947_v62 = vadd.f32 %v595_v55, %v243_v54  ;;  %v615_v51 = vld [vmem:[%s4961_s1 + $0x7e0] sm:$0xff] }
  0xd7   :  { %1279 = vst.msk [vmem:[%s4962_s2 + $0x690] sm:$0xff] %vm1067_vm0, %v925_v60  ;;  %v245_v60 = vld [vmem:[%s4960_s0 + $0x750] sm:$0xff]  ;;  %v948_v1 = vadd.f32 %v596_v58, %v244_v57  ;;  %v616_v54 = vld [vmem:[%s4961_s1 + $0x7e8] sm:$0x3f] }
  0xd8   :  { %1280 = vst.msk [vmem:[%s4962_s2 + $0x698] sm:$0x3f] %vm1069_vm1, %v926_v63  ;;  %v246_v63 = vld [vmem:[%s4960_s0 + $0x758] sm:$0x3f]  ;;  %v949_v4 = vadd.f32 %v597_v61, %v245_v60  ;;  %v617_v57 = vld [vmem:[%s4961_s1 + $0x7f0] sm:$0xff] }
  0xd9   :  { %1281 = vst.msk [vmem:[%s4962_s2 + $0x6a0] sm:$0xff] %vm1067_vm0, %v927_v2  ;;  %v247_v2 = vld [vmem:[%s4960_s0 + $0x760] sm:$0xff]  ;;  %v950_v7 = vadd.f32 %v598_v0, %v246_v63  ;;  %v618_v60 = vld [vmem:[%s4961_s1 + $0x7f8] sm:$0x3f] }
  0xda   :  { %1282 = vst.msk [vmem:[%s4962_s2 + $0x6a8] sm:$0x3f] %vm1069_vm1, %v928_v5  ;;  %v248_v5 = vld [vmem:[%s4960_s0 + $0x768] sm:$0x3f]  ;;  %v951_v10 = vadd.f32 %v599_v3, %v247_v2  ;;  %v619_v63 = vld [vmem:[%s4961_s1 + $0x800] sm:$0xff] }
  0xdb   :  { %1283 = vst.msk [vmem:[%s4962_s2 + $0x6b0] sm:$0xff] %vm1067_vm0, %v929_v8  ;;  %v249_v8 = vld [vmem:[%s4960_s0 + $0x770] sm:$0xff]  ;;  %v952_v13 = vadd.f32 %v600_v6, %v248_v5  ;;  %v620_v2 = vld [vmem:[%s4961_s1 + $0x808] sm:$0x3f] }
  0xdc   :  { %1284 = vst.msk [vmem:[%s4962_s2 + $0x6b8] sm:$0x3f] %vm1069_vm1, %v930_v11  ;;  %v250_v11 = vld [vmem:[%s4960_s0 + $0x778] sm:$0x3f]  ;;  %v953_v16 = vadd.f32 %v601_v9, %v249_v8  ;;  %v621_v5 = vld [vmem:[%s4961_s1 + $0x810] sm:$0xff] }
  0xdd   :  { %1285 = vst.msk [vmem:[%s4962_s2 + $0x6c0] sm:$0xff] %vm1067_vm0, %v931_v14  ;;  %v251_v14 = vld [vmem:[%s4960_s0 + $0x780] sm:$0xff]  ;;  %v954_v19 = vadd.f32 %v602_v12, %v250_v11  ;;  %v622_v8 = vld [vmem:[%s4961_s1 + $0x818] sm:$0x3f] }
  0xde   :  { %1286 = vst.msk [vmem:[%s4962_s2 + $0x6c8] sm:$0x3f] %vm1069_vm1, %v932_v17  ;;  %v252_v17 = vld [vmem:[%s4960_s0 + $0x788] sm:$0x3f]  ;;  %v955_v22 = vadd.f32 %v603_v15, %v251_v14  ;;  %v623_v11 = vld [vmem:[%s4961_s1 + $0x820] sm:$0xff] }
  0xdf   :  { %1287 = vst.msk [vmem:[%s4962_s2 + $0x6d0] sm:$0xff] %vm1067_vm0, %v933_v20  ;;  %v253_v20 = vld [vmem:[%s4960_s0 + $0x790] sm:$0xff]  ;;  %v956_v25 = vadd.f32 %v604_v18, %v252_v17  ;;  %v624_v14 = vld [vmem:[%s4961_s1 + $0x828] sm:$0x3f] }
  0xe0   :  { %1288 = vst.msk [vmem:[%s4962_s2 + $0x6d8] sm:$0x3f] %vm1069_vm1, %v934_v23  ;;  %v254_v23 = vld [vmem:[%s4960_s0 + $0x798] sm:$0x3f]  ;;  %v957_v28 = vadd.f32 %v605_v21, %v253_v20  ;;  %v625_v17 = vld [vmem:[%s4961_s1 + $0x830] sm:$0xff] }
  0xe1   :  { %1289 = vst.msk [vmem:[%s4962_s2 + $0x6e0] sm:$0xff] %vm1067_vm0, %v935_v26  ;;  %v255_v26 = vld [vmem:[%s4960_s0 + $0x7a0] sm:$0xff]  ;;  %v958_v31 = vadd.f32 %v606_v24, %v254_v23  ;;  %v626_v20 = vld [vmem:[%s4961_s1 + $0x838] sm:$0x3f] }
  0xe2   :  { %1290 = vst.msk [vmem:[%s4962_s2 + $0x6e8] sm:$0x3f] %vm1069_vm1, %v936_v29  ;;  %v256_v29 = vld [vmem:[%s4960_s0 + $0x7a8] sm:$0x3f]  ;;  %v959_v34 = vadd.f32 %v607_v27, %v255_v26  ;;  %v627_v23 = vld [vmem:[%s4961_s1 + $0x840] sm:$0xff] }
  0xe3   :  { %1291 = vst.msk [vmem:[%s4962_s2 + $0x6f0] sm:$0xff] %vm1067_vm0, %v937_v32  ;;  %v257_v32 = vld [vmem:[%s4960_s0 + $0x7b0] sm:$0xff]  ;;  %v960_v37 = vadd.f32 %v608_v30, %v256_v29  ;;  %v628_v26 = vld [vmem:[%s4961_s1 + $0x848] sm:$0x3f] }
  0xe4   :  { %1292 = vst.msk [vmem:[%s4962_s2 + $0x6f8] sm:$0x3f] %vm1069_vm1, %v938_v35  ;;  %v258_v35 = vld [vmem:[%s4960_s0 + $0x7b8] sm:$0x3f]  ;;  %v961_v40 = vadd.f32 %v609_v33, %v257_v32  ;;  %v629_v29 = vld [vmem:[%s4961_s1 + $0x850] sm:$0xff] }
  0xe5   :  { %1293 = vst.msk [vmem:[%s4962_s2 + $0x700] sm:$0xff] %vm1067_vm0, %v939_v38  ;;  %v259_v38 = vld [vmem:[%s4960_s0 + $0x7c0] sm:$0xff]  ;;  %v962_v43 = vadd.f32 %v610_v36, %v258_v35  ;;  %v630_v32 = vld [vmem:[%s4961_s1 + $0x858] sm:$0x3f] }
  0xe6   :  { %1294 = vst.msk [vmem:[%s4962_s2 + $0x708] sm:$0x3f] %vm1069_vm1, %v940_v41  ;;  %v260_v41 = vld [vmem:[%s4960_s0 + $0x7c8] sm:$0x3f]  ;;  %v963_v46 = vadd.f32 %v611_v39, %v259_v38  ;;  %v631_v35 = vld [vmem:[%s4961_s1 + $0x860] sm:$0xff] }
  0xe7   :  { %1295 = vst.msk [vmem:[%s4962_s2 + $0x710] sm:$0xff] %vm1067_vm0, %v941_v44  ;;  %v261_v44 = vld [vmem:[%s4960_s0 + $0x7d0] sm:$0xff]  ;;  %v964_v49 = vadd.f32 %v612_v42, %v260_v41  ;;  %v632_v38 = vld [vmem:[%s4961_s1 + $0x868] sm:$0x3f] }
  0xe8   :  { %1296 = vst.msk [vmem:[%s4962_s2 + $0x718] sm:$0x3f] %vm1069_vm1, %v942_v47  ;;  %v262_v47 = vld [vmem:[%s4960_s0 + $0x7d8] sm:$0x3f]  ;;  %v965_v52 = vadd.f32 %v613_v45, %v261_v44  ;;  %v633_v41 = vld [vmem:[%s4961_s1 + $0x870] sm:$0xff] }
  0xe9   :  { %1297 = vst.msk [vmem:[%s4962_s2 + $0x720] sm:$0xff] %vm1067_vm0, %v943_v50  ;;  %v263_v50 = vld [vmem:[%s4960_s0 + $0x7e0] sm:$0xff]  ;;  %v966_v55 = vadd.f32 %v614_v48, %v262_v47  ;;  %v634_v44 = vld [vmem:[%s4961_s1 + $0x878] sm:$0x3f] }
  0xea   :  { %1298 = vst.msk [vmem:[%s4962_s2 + $0x728] sm:$0x3f] %vm1069_vm1, %v944_v53  ;;  %v264_v53 = vld [vmem:[%s4960_s0 + $0x7e8] sm:$0x3f]  ;;  %v967_v58 = vadd.f32 %v615_v51, %v263_v50  ;;  %v635_v47 = vld [vmem:[%s4961_s1 + $0x880] sm:$0xff] }
  0xeb   :  { %1299 = vst.msk [vmem:[%s4962_s2 + $0x730] sm:$0xff] %vm1067_vm0, %v945_v56  ;;  %v265_v56 = vld [vmem:[%s4960_s0 + $0x7f0] sm:$0xff]  ;;  %v968_v61 = vadd.f32 %v616_v54, %v264_v53  ;;  %v636_v50 = vld [vmem:[%s4961_s1 + $0x888] sm:$0x3f] }
  0xec   :  { %1300 = vst.msk [vmem:[%s4962_s2 + $0x738] sm:$0x3f] %vm1069_vm1, %v946_v59  ;;  %v266_v59 = vld [vmem:[%s4960_s0 + $0x7f8] sm:$0x3f]  ;;  %v969_v0 = vadd.f32 %v617_v57, %v265_v56  ;;  %v637_v53 = vld [vmem:[%s4961_s1 + $0x890] sm:$0xff] }
  0xed   :  { %1301 = vst.msk [vmem:[%s4962_s2 + $0x740] sm:$0xff] %vm1067_vm0, %v947_v62  ;;  %v267_v62 = vld [vmem:[%s4960_s0 + $0x800] sm:$0xff]  ;;  %v970_v3 = vadd.f32 %v618_v60, %v266_v59  ;;  %v638_v56 = vld [vmem:[%s4961_s1 + $0x898] sm:$0x3f] }
  0xee   :  { %1302 = vst.msk [vmem:[%s4962_s2 + $0x748] sm:$0x3f] %vm1069_vm1, %v948_v1  ;;  %v268_v1 = vld [vmem:[%s4960_s0 + $0x808] sm:$0x3f]  ;;  %v971_v6 = vadd.f32 %v619_v63, %v267_v62  ;;  %v639_v59 = vld [vmem:[%s4961_s1 + $0x8a0] sm:$0xff] }
  0xef   :  { %1303 = vst.msk [vmem:[%s4962_s2 + $0x750] sm:$0xff] %vm1067_vm0, %v949_v4  ;;  %v269_v4 = vld [vmem:[%s4960_s0 + $0x810] sm:$0xff]  ;;  %v972_v9 = vadd.f32 %v620_v2, %v268_v1  ;;  %v640_v62 = vld [vmem:[%s4961_s1 + $0x8a8] sm:$0x3f] }
  0xf0   :  { %1304 = vst.msk [vmem:[%s4962_s2 + $0x758] sm:$0x3f] %vm1069_vm1, %v950_v7  ;;  %v270_v7 = vld [vmem:[%s4960_s0 + $0x818] sm:$0x3f]  ;;  %v973_v12 = vadd.f32 %v621_v5, %v269_v4  ;;  %v641_v1 = vld [vmem:[%s4961_s1 + $0x8b0] sm:$0xff] }
  0xf1   :  { %1305 = vst.msk [vmem:[%s4962_s2 + $0x760] sm:$0xff] %vm1067_vm0, %v951_v10  ;;  %v271_v10 = vld [vmem:[%s4960_s0 + $0x820] sm:$0xff]  ;;  %v974_v15 = vadd.f32 %v622_v8, %v270_v7  ;;  %v642_v4 = vld [vmem:[%s4961_s1 + $0x8b8] sm:$0x3f] }
  0xf2   :  { %1306 = vst.msk [vmem:[%s4962_s2 + $0x768] sm:$0x3f] %vm1069_vm1, %v952_v13  ;;  %v272_v13 = vld [vmem:[%s4960_s0 + $0x828] sm:$0x3f]  ;;  %v975_v18 = vadd.f32 %v623_v11, %v271_v10  ;;  %v643_v7 = vld [vmem:[%s4961_s1 + $0x8c0] sm:$0xff] }
  0xf3   :  { %1307 = vst.msk [vmem:[%s4962_s2 + $0x770] sm:$0xff] %vm1067_vm0, %v953_v16  ;;  %v273_v16 = vld [vmem:[%s4960_s0 + $0x830] sm:$0xff]  ;;  %v976_v21 = vadd.f32 %v624_v14, %v272_v13  ;;  %v644_v10 = vld [vmem:[%s4961_s1 + $0x8c8] sm:$0x3f] }
  0xf4   :  { %1308 = vst.msk [vmem:[%s4962_s2 + $0x778] sm:$0x3f] %vm1069_vm1, %v954_v19  ;;  %v274_v19 = vld [vmem:[%s4960_s0 + $0x838] sm:$0x3f]  ;;  %v977_v24 = vadd.f32 %v625_v17, %v273_v16  ;;  %v645_v13 = vld [vmem:[%s4961_s1 + $0x8d0] sm:$0xff] }
  0xf5   :  { %1309 = vst.msk [vmem:[%s4962_s2 + $0x780] sm:$0xff] %vm1067_vm0, %v955_v22  ;;  %v275_v22 = vld [vmem:[%s4960_s0 + $0x840] sm:$0xff]  ;;  %v978_v27 = vadd.f32 %v626_v20, %v274_v19  ;;  %v646_v16 = vld [vmem:[%s4961_s1 + $0x8d8] sm:$0x3f] }
  0xf6   :  { %1310 = vst.msk [vmem:[%s4962_s2 + $0x788] sm:$0x3f] %vm1069_vm1, %v956_v25  ;;  %v276_v25 = vld [vmem:[%s4960_s0 + $0x848] sm:$0x3f]  ;;  %v979_v30 = vadd.f32 %v627_v23, %v275_v22  ;;  %v647_v19 = vld [vmem:[%s4961_s1 + $0x8e0] sm:$0xff] }
  0xf7   :  { %1311 = vst.msk [vmem:[%s4962_s2 + $0x790] sm:$0xff] %vm1067_vm0, %v957_v28  ;;  %v277_v28 = vld [vmem:[%s4960_s0 + $0x850] sm:$0xff]  ;;  %v980_v33 = vadd.f32 %v628_v26, %v276_v25  ;;  %v648_v22 = vld [vmem:[%s4961_s1 + $0x8e8] sm:$0x3f] }
  0xf8   :  { %1312 = vst.msk [vmem:[%s4962_s2 + $0x798] sm:$0x3f] %vm1069_vm1, %v958_v31  ;;  %v278_v31 = vld [vmem:[%s4960_s0 + $0x858] sm:$0x3f]  ;;  %v981_v36 = vadd.f32 %v629_v29, %v277_v28  ;;  %v649_v25 = vld [vmem:[%s4961_s1 + $0x8f0] sm:$0xff] }
  0xf9   :  { %1313 = vst.msk [vmem:[%s4962_s2 + $0x7a0] sm:$0xff] %vm1067_vm0, %v959_v34  ;;  %v279_v34 = vld [vmem:[%s4960_s0 + $0x860] sm:$0xff]  ;;  %v982_v39 = vadd.f32 %v630_v32, %v278_v31  ;;  %v650_v28 = vld [vmem:[%s4961_s1 + $0x8f8] sm:$0x3f] }
  0xfa   :  { %1314 = vst.msk [vmem:[%s4962_s2 + $0x7a8] sm:$0x3f] %vm1069_vm1, %v960_v37  ;;  %v280_v37 = vld [vmem:[%s4960_s0 + $0x868] sm:$0x3f]  ;;  %v983_v42 = vadd.f32 %v631_v35, %v279_v34  ;;  %v651_v31 = vld [vmem:[%s4961_s1 + $0x900] sm:$0xff] }
  0xfb   :  { %1315 = vst.msk [vmem:[%s4962_s2 + $0x7b0] sm:$0xff] %vm1067_vm0, %v961_v40  ;;  %v281_v40 = vld [vmem:[%s4960_s0 + $0x870] sm:$0xff]  ;;  %v984_v45 = vadd.f32 %v632_v38, %v280_v37  ;;  %v652_v34 = vld [vmem:[%s4961_s1 + $0x908] sm:$0x3f] }
  0xfc   :  { %1316 = vst.msk [vmem:[%s4962_s2 + $0x7b8] sm:$0x3f] %vm1069_vm1, %v962_v43  ;;  %v282_v43 = vld [vmem:[%s4960_s0 + $0x878] sm:$0x3f]  ;;  %v985_v48 = vadd.f32 %v633_v41, %v281_v40  ;;  %v653_v37 = vld [vmem:[%s4961_s1 + $0x910] sm:$0xff] }
  0xfd   :  { %1317 = vst.msk [vmem:[%s4962_s2 + $0x7c0] sm:$0xff] %vm1067_vm0, %v963_v46  ;;  %v283_v46 = vld [vmem:[%s4960_s0 + $0x880] sm:$0xff]  ;;  %v986_v51 = vadd.f32 %v634_v44, %v282_v43  ;;  %v654_v40 = vld [vmem:[%s4961_s1 + $0x918] sm:$0x3f] }
  0xfe   :  { %1318 = vst.msk [vmem:[%s4962_s2 + $0x7c8] sm:$0x3f] %vm1069_vm1, %v964_v49  ;;  %v284_v49 = vld [vmem:[%s4960_s0 + $0x888] sm:$0x3f]  ;;  %v987_v54 = vadd.f32 %v635_v47, %v283_v46  ;;  %v655_v43 = vld [vmem:[%s4961_s1 + $0x920] sm:$0xff] }
  0xff   :  { %1319 = vst.msk [vmem:[%s4962_s2 + $0x7d0] sm:$0xff] %vm1067_vm0, %v965_v52  ;;  %v285_v52 = vld [vmem:[%s4960_s0 + $0x890] sm:$0xff]  ;;  %v988_v57 = vadd.f32 %v636_v50, %v284_v49  ;;  %v656_v46 = vld [vmem:[%s4961_s1 + $0x928] sm:$0x3f] }
 0x100   :  { %1320 = vst.msk [vmem:[%s4962_s2 + $0x7d8] sm:$0x3f] %vm1069_vm1, %v966_v55  ;;  %v286_v55 = vld [vmem:[%s4960_s0 + $0x898] sm:$0x3f]  ;;  %v989_v60 = vadd.f32 %v637_v53, %v285_v52  ;;  %v657_v49 = vld [vmem:[%s4961_s1 + $0x930] sm:$0xff] }
 0x101   :  { %1321 = vst.msk [vmem:[%s4962_s2 + $0x7e0] sm:$0xff] %vm1067_vm0, %v967_v58  ;;  %v287_v58 = vld [vmem:[%s4960_s0 + $0x8a0] sm:$0xff]  ;;  %v990_v63 = vadd.f32 %v638_v56, %v286_v55  ;;  %v658_v52 = vld [vmem:[%s4961_s1 + $0x938] sm:$0x3f] }
 0x102   :  { %1322 = vst.msk [vmem:[%s4962_s2 + $0x7e8] sm:$0x3f] %vm1069_vm1, %v968_v61  ;;  %v288_v61 = vld [vmem:[%s4960_s0 + $0x8a8] sm:$0x3f]  ;;  %v991_v2 = vadd.f32 %v639_v59, %v287_v58  ;;  %v659_v55 = vld [vmem:[%s4961_s1 + $0x940] sm:$0xff] }
 0x103   :  { %1323 = vst.msk [vmem:[%s4962_s2 + $0x7f0] sm:$0xff] %vm1067_vm0, %v969_v0  ;;  %v289_v0 = vld [vmem:[%s4960_s0 + $0x8b0] sm:$0xff]  ;;  %v992_v5 = vadd.f32 %v640_v62, %v288_v61  ;;  %v660_v58 = vld [vmem:[%s4961_s1 + $0x948] sm:$0x3f] }
 0x104   :  { %1324 = vst.msk [vmem:[%s4962_s2 + $0x7f8] sm:$0x3f] %vm1069_vm1, %v970_v3  ;;  %v290_v3 = vld [vmem:[%s4960_s0 + $0x8b8] sm:$0x3f]  ;;  %v993_v8 = vadd.f32 %v641_v1, %v289_v0  ;;  %v661_v61 = vld [vmem:[%s4961_s1 + $0x950] sm:$0xff] }
 0x105   :  { %1325 = vst.msk [vmem:[%s4962_s2 + $0x800] sm:$0xff] %vm1067_vm0, %v971_v6  ;;  %v291_v6 = vld [vmem:[%s4960_s0 + $0x8c0] sm:$0xff]  ;;  %v994_v11 = vadd.f32 %v642_v4, %v290_v3  ;;  %v662_v0 = vld [vmem:[%s4961_s1 + $0x958] sm:$0x3f] }
 0x106   :  { %1326 = vst.msk [vmem:[%s4962_s2 + $0x808] sm:$0x3f] %vm1069_vm1, %v972_v9  ;;  %v292_v9 = vld [vmem:[%s4960_s0 + $0x8c8] sm:$0x3f]  ;;  %v995_v14 = vadd.f32 %v643_v7, %v291_v6  ;;  %v663_v3 = vld [vmem:[%s4961_s1 + $0x960] sm:$0xff] }
 0x107   :  { %1327 = vst.msk [vmem:[%s4962_s2 + $0x810] sm:$0xff] %vm1067_vm0, %v973_v12  ;;  %v293_v12 = vld [vmem:[%s4960_s0 + $0x8d0] sm:$0xff]  ;;  %v996_v17 = vadd.f32 %v644_v10, %v292_v9  ;;  %v664_v6 = vld [vmem:[%s4961_s1 + $0x968] sm:$0x3f] }
 0x108   :  { %1328 = vst.msk [vmem:[%s4962_s2 + $0x818] sm:$0x3f] %vm1069_vm1, %v974_v15  ;;  %v294_v15 = vld [vmem:[%s4960_s0 + $0x8d8] sm:$0x3f]  ;;  %v997_v20 = vadd.f32 %v645_v13, %v293_v12  ;;  %v665_v9 = vld [vmem:[%s4961_s1 + $0x970] sm:$0xff] }
 0x109   :  { %1329 = vst.msk [vmem:[%s4962_s2 + $0x820] sm:$0xff] %vm1067_vm0, %v975_v18  ;;  %v295_v18 = vld [vmem:[%s4960_s0 + $0x8e0] sm:$0xff]  ;;  %v998_v23 = vadd.f32 %v646_v16, %v294_v15  ;;  %v666_v12 = vld [vmem:[%s4961_s1 + $0x978] sm:$0x3f] }
 0x10a   :  { %1330 = vst.msk [vmem:[%s4962_s2 + $0x828] sm:$0x3f] %vm1069_vm1, %v976_v21  ;;  %v296_v21 = vld [vmem:[%s4960_s0 + $0x8e8] sm:$0x3f]  ;;  %v999_v26 = vadd.f32 %v647_v19, %v295_v18  ;;  %v667_v15 = vld [vmem:[%s4961_s1 + $0x980] sm:$0xff] }
 0x10b   :  { %1331 = vst.msk [vmem:[%s4962_s2 + $0x830] sm:$0xff] %vm1067_vm0, %v977_v24  ;;  %v297_v24 = vld [vmem:[%s4960_s0 + $0x8f0] sm:$0xff]  ;;  %v1000_v29 = vadd.f32 %v648_v22, %v296_v21  ;;  %v668_v18 = vld [vmem:[%s4961_s1 + $0x988] sm:$0x3f] }
 0x10c   :  { %1332 = vst.msk [vmem:[%s4962_s2 + $0x838] sm:$0x3f] %vm1069_vm1, %v978_v27  ;;  %v298_v27 = vld [vmem:[%s4960_s0 + $0x8f8] sm:$0x3f]  ;;  %v1001_v32 = vadd.f32 %v649_v25, %v297_v24  ;;  %v669_v21 = vld [vmem:[%s4961_s1 + $0x990] sm:$0xff] }
 0x10d   :  { %1333 = vst.msk [vmem:[%s4962_s2 + $0x840] sm:$0xff] %vm1067_vm0, %v979_v30  ;;  %v299_v30 = vld [vmem:[%s4960_s0 + $0x900] sm:$0xff]  ;;  %v1002_v35 = vadd.f32 %v650_v28, %v298_v27  ;;  %v670_v24 = vld [vmem:[%s4961_s1 + $0x998] sm:$0x3f] }
 0x10e   :  { %1334 = vst.msk [vmem:[%s4962_s2 + $0x848] sm:$0x3f] %vm1069_vm1, %v980_v33  ;;  %v300_v33 = vld [vmem:[%s4960_s0 + $0x908] sm:$0x3f]  ;;  %v1003_v38 = vadd.f32 %v651_v31, %v299_v30  ;;  %v671_v27 = vld [vmem:[%s4961_s1 + $0x9a0] sm:$0xff] }
 0x10f   :  { %1335 = vst.msk [vmem:[%s4962_s2 + $0x850] sm:$0xff] %vm1067_vm0, %v981_v36  ;;  %v301_v36 = vld [vmem:[%s4960_s0 + $0x910] sm:$0xff]  ;;  %v1004_v41 = vadd.f32 %v652_v34, %v300_v33  ;;  %v672_v30 = vld [vmem:[%s4961_s1 + $0x9a8] sm:$0x3f] }
 0x110   :  { %1336 = vst.msk [vmem:[%s4962_s2 + $0x858] sm:$0x3f] %vm1069_vm1, %v982_v39  ;;  %v302_v39 = vld [vmem:[%s4960_s0 + $0x918] sm:$0x3f]  ;;  %v1005_v44 = vadd.f32 %v653_v37, %v301_v36  ;;  %v673_v33 = vld [vmem:[%s4961_s1 + $0x9b0] sm:$0xff] }
 0x111   :  { %1337 = vst.msk [vmem:[%s4962_s2 + $0x860] sm:$0xff] %vm1067_vm0, %v983_v42  ;;  %v303_v42 = vld [vmem:[%s4960_s0 + $0x920] sm:$0xff]  ;;  %v1006_v47 = vadd.f32 %v654_v40, %v302_v39  ;;  %v674_v36 = vld [vmem:[%s4961_s1 + $0x9b8] sm:$0x3f] }
 0x112   :  { %1338 = vst.msk [vmem:[%s4962_s2 + $0x868] sm:$0x3f] %vm1069_vm1, %v984_v45  ;;  %v304_v45 = vld [vmem:[%s4960_s0 + $0x928] sm:$0x3f]  ;;  %v1007_v50 = vadd.f32 %v655_v43, %v303_v42  ;;  %v675_v39 = vld [vmem:[%s4961_s1 + $0x9c0] sm:$0xff] }
 0x113   :  { %1339 = vst.msk [vmem:[%s4962_s2 + $0x870] sm:$0xff] %vm1067_vm0, %v985_v48  ;;  %v305_v48 = vld [vmem:[%s4960_s0 + $0x930] sm:$0xff]  ;;  %v1008_v53 = vadd.f32 %v656_v46, %v304_v45  ;;  %v676_v42 = vld [vmem:[%s4961_s1 + $0x9c8] sm:$0x3f] }
 0x114   :  { %1340 = vst.msk [vmem:[%s4962_s2 + $0x878] sm:$0x3f] %vm1069_vm1, %v986_v51  ;;  %v306_v51 = vld [vmem:[%s4960_s0 + $0x938] sm:$0x3f]  ;;  %v1009_v56 = vadd.f32 %v657_v49, %v305_v48  ;;  %v677_v45 = vld [vmem:[%s4961_s1 + $0x9d0] sm:$0xff] }
 0x115   :  { %1341 = vst.msk [vmem:[%s4962_s2 + $0x880] sm:$0xff] %vm1067_vm0, %v987_v54  ;;  %v307_v54 = vld [vmem:[%s4960_s0 + $0x940] sm:$0xff]  ;;  %v1010_v59 = vadd.f32 %v658_v52, %v306_v51  ;;  %v678_v48 = vld [vmem:[%s4961_s1 + $0x9d8] sm:$0x3f] }
 0x116   :  { %1342 = vst.msk [vmem:[%s4962_s2 + $0x888] sm:$0x3f] %vm1069_vm1, %v988_v57  ;;  %v308_v57 = vld [vmem:[%s4960_s0 + $0x948] sm:$0x3f]  ;;  %v1011_v62 = vadd.f32 %v659_v55, %v307_v54  ;;  %v679_v51 = vld [vmem:[%s4961_s1 + $0x9e0] sm:$0xff] }
 0x117   :  { %1343 = vst.msk [vmem:[%s4962_s2 + $0x890] sm:$0xff] %vm1067_vm0, %v989_v60  ;;  %v309_v60 = vld [vmem:[%s4960_s0 + $0x950] sm:$0xff]  ;;  %v1012_v1 = vadd.f32 %v660_v58, %v308_v57  ;;  %v680_v54 = vld [vmem:[%s4961_s1 + $0x9e8] sm:$0x3f] }
 0x118   :  { %1344 = vst.msk [vmem:[%s4962_s2 + $0x898] sm:$0x3f] %vm1069_vm1, %v990_v63  ;;  %v310_v63 = vld [vmem:[%s4960_s0 + $0x958] sm:$0x3f]  ;;  %v1013_v4 = vadd.f32 %v661_v61, %v309_v60  ;;  %v681_v57 = vld [vmem:[%s4961_s1 + $0x9f0] sm:$0xff] }
 0x119   :  { %1345 = vst.msk [vmem:[%s4962_s2 + $0x8a0] sm:$0xff] %vm1067_vm0, %v991_v2  ;;  %v311_v2 = vld [vmem:[%s4960_s0 + $0x960] sm:$0xff]  ;;  %v1014_v7 = vadd.f32 %v662_v0, %v310_v63  ;;  %v682_v60 = vld [vmem:[%s4961_s1 + $0x9f8] sm:$0x3f] }
 0x11a   :  { %1346 = vst.msk [vmem:[%s4962_s2 + $0x8a8] sm:$0x3f] %vm1069_vm1, %v992_v5  ;;  %v312_v5 = vld [vmem:[%s4960_s0 + $0x968] sm:$0x3f]  ;;  %v1015_v10 = vadd.f32 %v663_v3, %v311_v2  ;;  %v683_v63 = vld [vmem:[%s4961_s1 + $0xa00] sm:$0xff] }
 0x11b   :  { %1347 = vst.msk [vmem:[%s4962_s2 + $0x8b0] sm:$0xff] %vm1067_vm0, %v993_v8  ;;  %v313_v8 = vld [vmem:[%s4960_s0 + $0x970] sm:$0xff]  ;;  %v1016_v13 = vadd.f32 %v664_v6, %v312_v5  ;;  %v684_v2 = vld [vmem:[%s4961_s1 + $0xa08] sm:$0x3f] }
 0x11c   :  { %1348 = vst.msk [vmem:[%s4962_s2 + $0x8b8] sm:$0x3f] %vm1069_vm1, %v994_v11  ;;  %v314_v11 = vld [vmem:[%s4960_s0 + $0x978] sm:$0x3f]  ;;  %v1017_v16 = vadd.f32 %v665_v9, %v313_v8  ;;  %v685_v5 = vld [vmem:[%s4961_s1 + $0xa10] sm:$0xff] }
 0x11d   :  { %1349 = vst.msk [vmem:[%s4962_s2 + $0x8c0] sm:$0xff] %vm1067_vm0, %v995_v14  ;;  %v315_v14 = vld [vmem:[%s4960_s0 + $0x980] sm:$0xff]  ;;  %v1018_v19 = vadd.f32 %v666_v12, %v314_v11  ;;  %v686_v8 = vld [vmem:[%s4961_s1 + $0xa18] sm:$0x3f] }
 0x11e   :  { %1350 = vst.msk [vmem:[%s4962_s2 + $0x8c8] sm:$0x3f] %vm1069_vm1, %v996_v17  ;;  %v316_v17 = vld [vmem:[%s4960_s0 + $0x988] sm:$0x3f]  ;;  %v1019_v22 = vadd.f32 %v667_v15, %v315_v14  ;;  %v687_v11 = vld [vmem:[%s4961_s1 + $0xa20] sm:$0xff] }
 0x11f   :  { %1351 = vst.msk [vmem:[%s4962_s2 + $0x8d0] sm:$0xff] %vm1067_vm0, %v997_v20  ;;  %v317_v20 = vld [vmem:[%s4960_s0 + $0x990] sm:$0xff]  ;;  %v1020_v25 = vadd.f32 %v668_v18, %v316_v17  ;;  %v688_v14 = vld [vmem:[%s4961_s1 + $0xa28] sm:$0x3f] }
 0x120   :  { %1352 = vst.msk [vmem:[%s4962_s2 + $0x8d8] sm:$0x3f] %vm1069_vm1, %v998_v23  ;;  %v318_v23 = vld [vmem:[%s4960_s0 + $0x998] sm:$0x3f]  ;;  %v1021_v28 = vadd.f32 %v669_v21, %v317_v20  ;;  %v689_v17 = vld [vmem:[%s4961_s1 + $0xa30] sm:$0xff] }
 0x121   :  { %1353 = vst.msk [vmem:[%s4962_s2 + $0x8e0] sm:$0xff] %vm1067_vm0, %v999_v26  ;;  %v319_v26 = vld [vmem:[%s4960_s0 + $0x9a0] sm:$0xff]  ;;  %v1022_v31 = vadd.f32 %v670_v24, %v318_v23  ;;  %v690_v20 = vld [vmem:[%s4961_s1 + $0xa38] sm:$0x3f] }
 0x122   :  { %1354 = vst.msk [vmem:[%s4962_s2 + $0x8e8] sm:$0x3f] %vm1069_vm1, %v1000_v29  ;;  %v320_v29 = vld [vmem:[%s4960_s0 + $0x9a8] sm:$0x3f]  ;;  %v1023_v34 = vadd.f32 %v671_v27, %v319_v26  ;;  %v691_v23 = vld [vmem:[%s4961_s1 + $0xa40] sm:$0xff] }
 0x123   :  { %1355 = vst.msk [vmem:[%s4962_s2 + $0x8f0] sm:$0xff] %vm1067_vm0, %v1001_v32  ;;  %v321_v32 = vld [vmem:[%s4960_s0 + $0x9b0] sm:$0xff]  ;;  %v1024_v37 = vadd.f32 %v672_v30, %v320_v29  ;;  %v692_v26 = vld [vmem:[%s4961_s1 + $0xa48] sm:$0x3f] }
 0x124   :  { %1356 = vst.msk [vmem:[%s4962_s2 + $0x8f8] sm:$0x3f] %vm1069_vm1, %v1002_v35  ;;  %v322_v35 = vld [vmem:[%s4960_s0 + $0x9b8] sm:$0x3f]  ;;  %v1025_v40 = vadd.f32 %v673_v33, %v321_v32  ;;  %v693_v29 = vld [vmem:[%s4961_s1 + $0xa50] sm:$0xff] }
 0x125   :  { %1357 = vst.msk [vmem:[%s4962_s2 + $0x900] sm:$0xff] %vm1067_vm0, %v1003_v38  ;;  %v323_v38 = vld [vmem:[%s4960_s0 + $0x9c0] sm:$0xff]  ;;  %v1026_v43 = vadd.f32 %v674_v36, %v322_v35  ;;  %v694_v32 = vld [vmem:[%s4961_s1 + $0xa58] sm:$0x3f] }
 0x126   :  { %1358 = vst.msk [vmem:[%s4962_s2 + $0x908] sm:$0x3f] %vm1069_vm1, %v1004_v41  ;;  %v324_v41 = vld [vmem:[%s4960_s0 + $0x9c8] sm:$0x3f]  ;;  %v1027_v46 = vadd.f32 %v675_v39, %v323_v38  ;;  %v695_v35 = vld [vmem:[%s4961_s1 + $0xa60] sm:$0xff] }
 0x127   :  { %1359 = vst.msk [vmem:[%s4962_s2 + $0x910] sm:$0xff] %vm1067_vm0, %v1005_v44  ;;  %v325_v44 = vld [vmem:[%s4960_s0 + $0x9d0] sm:$0xff]  ;;  %v1028_v49 = vadd.f32 %v676_v42, %v324_v41  ;;  %v696_v38 = vld [vmem:[%s4961_s1 + $0xa68] sm:$0x3f] }
 0x128   :  { %1360 = vst.msk [vmem:[%s4962_s2 + $0x918] sm:$0x3f] %vm1069_vm1, %v1006_v47  ;;  %v326_v47 = vld [vmem:[%s4960_s0 + $0x9d8] sm:$0x3f]  ;;  %v1029_v52 = vadd.f32 %v677_v45, %v325_v44  ;;  %v697_v41 = vld [vmem:[%s4961_s1 + $0xa70] sm:$0xff] }
 0x129   :  { %1361 = vst.msk [vmem:[%s4962_s2 + $0x920] sm:$0xff] %vm1067_vm0, %v1007_v50  ;;  %v327_v50 = vld [vmem:[%s4960_s0 + $0x9e0] sm:$0xff]  ;;  %v1030_v55 = vadd.f32 %v678_v48, %v326_v47  ;;  %v698_v44 = vld [vmem:[%s4961_s1 + $0xa78] sm:$0x3f] }
 0x12a   :  { %1362 = vst.msk [vmem:[%s4962_s2 + $0x928] sm:$0x3f] %vm1069_vm1, %v1008_v53  ;;  %v328_v53 = vld [vmem:[%s4960_s0 + $0x9e8] sm:$0x3f]  ;;  %v1031_v58 = vadd.f32 %v679_v51, %v327_v50  ;;  %v699_v47 = vld [vmem:[%s4961_s1 + $0xa80] sm:$0xff] }
 0x12b   :  { %1363 = vst.msk [vmem:[%s4962_s2 + $0x930] sm:$0xff] %vm1067_vm0, %v1009_v56  ;;  %v329_v56 = vld [vmem:[%s4960_s0 + $0x9f0] sm:$0xff]  ;;  %v1032_v61 = vadd.f32 %v680_v54, %v328_v53  ;;  %v700_v50 = vld [vmem:[%s4961_s1 + $0xa88] sm:$0x3f] }
 0x12c   :  { %1364 = vst.msk [vmem:[%s4962_s2 + $0x938] sm:$0x3f] %vm1069_vm1, %v1010_v59  ;;  %v330_v59 = vld [vmem:[%s4960_s0 + $0x9f8] sm:$0x3f]  ;;  %v1033_v0 = vadd.f32 %v681_v57, %v329_v56  ;;  %v701_v53 = vld [vmem:[%s4961_s1 + $0xa90] sm:$0xff] }
 0x12d   :  { %1365 = vst.msk [vmem:[%s4962_s2 + $0x940] sm:$0xff] %vm1067_vm0, %v1011_v62  ;;  %v331_v62 = vld [vmem:[%s4960_s0 + $0xa00] sm:$0xff]  ;;  %v1034_v3 = vadd.f32 %v682_v60, %v330_v59  ;;  %v702_v56 = vld [vmem:[%s4961_s1 + $0xa98] sm:$0x3f] }
 0x12e   :  { %1366 = vst.msk [vmem:[%s4962_s2 + $0x948] sm:$0x3f] %vm1069_vm1, %v1012_v1  ;;  %v332_v1 = vld [vmem:[%s4960_s0 + $0xa08] sm:$0x3f]  ;;  %v1035_v6 = vadd.f32 %v683_v63, %v331_v62  ;;  %v703_v59 = vld [vmem:[%s4961_s1 + $0xaa0] sm:$0xff] }
 0x12f   :  { %1367 = vst.msk [vmem:[%s4962_s2 + $0x950] sm:$0xff] %vm1067_vm0, %v1013_v4  ;;  %v333_v4 = vld [vmem:[%s4960_s0 + $0xa10] sm:$0xff]  ;;  %v1036_v9 = vadd.f32 %v684_v2, %v332_v1  ;;  %v704_v62 = vld [vmem:[%s4961_s1 + $0xaa8] sm:$0x3f] }
 0x130   :  { %1368 = vst.msk [vmem:[%s4962_s2 + $0x958] sm:$0x3f] %vm1069_vm1, %v1014_v7  ;;  %v334_v7 = vld [vmem:[%s4960_s0 + $0xa18] sm:$0x3f]  ;;  %v1037_v12 = vadd.f32 %v685_v5, %v333_v4  ;;  %v705_v1 = vld [vmem:[%s4961_s1 + $0xab0] sm:$0xff] }
 0x131   :  { %1369 = vst.msk [vmem:[%s4962_s2 + $0x960] sm:$0xff] %vm1067_vm0, %v1015_v10  ;;  %v335_v10 = vld [vmem:[%s4960_s0 + $0xa20] sm:$0xff]  ;;  %v1038_v15 = vadd.f32 %v686_v8, %v334_v7  ;;  %v706_v4 = vld [vmem:[%s4961_s1 + $0xab8] sm:$0x3f] }
 0x132   :  { %1370 = vst.msk [vmem:[%s4962_s2 + $0x968] sm:$0x3f] %vm1069_vm1, %v1016_v13  ;;  %v336_v13 = vld [vmem:[%s4960_s0 + $0xa28] sm:$0x3f]  ;;  %v1039_v18 = vadd.f32 %v687_v11, %v335_v10  ;;  %v707_v7 = vld [vmem:[%s4961_s1 + $0xac0] sm:$0xff] }
 0x133   :  { %1371 = vst.msk [vmem:[%s4962_s2 + $0x970] sm:$0xff] %vm1067_vm0, %v1017_v16  ;;  %v337_v16 = vld [vmem:[%s4960_s0 + $0xa30] sm:$0xff]  ;;  %v1040_v21 = vadd.f32 %v688_v14, %v336_v13  ;;  %v708_v10 = vld [vmem:[%s4961_s1 + $0xac8] sm:$0x3f] }
 0x134   :  { %1372 = vst.msk [vmem:[%s4962_s2 + $0x978] sm:$0x3f] %vm1069_vm1, %v1018_v19  ;;  %v338_v19 = vld [vmem:[%s4960_s0 + $0xa38] sm:$0x3f]  ;;  %v1041_v24 = vadd.f32 %v689_v17, %v337_v16  ;;  %v709_v13 = vld [vmem:[%s4961_s1 + $0xad0] sm:$0xff] }
 0x135   :  { %1373 = vst.msk [vmem:[%s4962_s2 + $0x980] sm:$0xff] %vm1067_vm0, %v1019_v22  ;;  %v339_v22 = vld [vmem:[%s4960_s0 + $0xa40] sm:$0xff]  ;;  %v1042_v27 = vadd.f32 %v690_v20, %v338_v19  ;;  %v710_v16 = vld [vmem:[%s4961_s1 + $0xad8] sm:$0x3f] }
 0x136   :  { %1374 = vst.msk [vmem:[%s4962_s2 + $0x988] sm:$0x3f] %vm1069_vm1, %v1020_v25  ;;  %v340_v25 = vld [vmem:[%s4960_s0 + $0xa48] sm:$0x3f]  ;;  %v1043_v30 = vadd.f32 %v691_v23, %v339_v22  ;;  %v711_v19 = vld [vmem:[%s4961_s1 + $0xae0] sm:$0xff] }
 0x137   :  { %1375 = vst.msk [vmem:[%s4962_s2 + $0x990] sm:$0xff] %vm1067_vm0, %v1021_v28  ;;  %v341_v28 = vld [vmem:[%s4960_s0 + $0xa50] sm:$0xff]  ;;  %v1044_v33 = vadd.f32 %v692_v26, %v340_v25  ;;  %v712_v22 = vld [vmem:[%s4961_s1 + $0xae8] sm:$0x3f] }
 0x138   :  { %1376 = vst.msk [vmem:[%s4962_s2 + $0x998] sm:$0x3f] %vm1069_vm1, %v1022_v31  ;;  %v342_v31 = vld [vmem:[%s4960_s0 + $0xa58] sm:$0x3f]  ;;  %v1045_v36 = vadd.f32 %v693_v29, %v341_v28  ;;  %v713_v25 = vld [vmem:[%s4961_s1 + $0xaf0] sm:$0xff] }
 0x139   :  { %1377 = vst.msk [vmem:[%s4962_s2 + $0x9a0] sm:$0xff] %vm1067_vm0, %v1023_v34  ;;  %v343_v34 = vld [vmem:[%s4960_s0 + $0xa60] sm:$0xff]  ;;  %v1046_v39 = vadd.f32 %v694_v32, %v342_v31  ;;  %v714_v28 = vld [vmem:[%s4961_s1 + $0xaf8] sm:$0x3f] }
 0x13a   :  { %1378 = vst.msk [vmem:[%s4962_s2 + $0x9a8] sm:$0x3f] %vm1069_vm1, %v1024_v37  ;;  %v344_v37 = vld [vmem:[%s4960_s0 + $0xa68] sm:$0x3f]  ;;  %v1047_v42 = vadd.f32 %v695_v35, %v343_v34 }
 0x13b   :  { %1379 = vst.msk [vmem:[%s4962_s2 + $0x9b0] sm:$0xff] %vm1067_vm0, %v1025_v40  ;;  %v345_v40 = vld [vmem:[%s4960_s0 + $0xa70] sm:$0xff]  ;;  %v1048_v45 = vadd.f32 %v696_v38, %v344_v37 }
 0x13c   :  { %1380 = vst.msk [vmem:[%s4962_s2 + $0x9b8] sm:$0x3f] %vm1069_vm1, %v1026_v43  ;;  %v346_v43 = vld [vmem:[%s4960_s0 + $0xa78] sm:$0x3f]  ;;  %v1049_v48 = vadd.f32 %v697_v41, %v345_v40 }
 0x13d   :  { %1381 = vst.msk [vmem:[%s4962_s2 + $0x9c0] sm:$0xff] %vm1067_vm0, %v1027_v46  ;;  %v347_v46 = vld [vmem:[%s4960_s0 + $0xa80] sm:$0xff]  ;;  %v1050_v51 = vadd.f32 %v698_v44, %v346_v43 }
 0x13e   :  { %1382 = vst.msk [vmem:[%s4962_s2 + $0x9c8] sm:$0x3f] %vm1069_vm1, %v1028_v49  ;;  %v348_v49 = vld [vmem:[%s4960_s0 + $0xa88] sm:$0x3f]  ;;  %v1051_v54 = vadd.f32 %v699_v47, %v347_v46 }
 0x13f   :  { %1383 = vst.msk [vmem:[%s4962_s2 + $0x9d0] sm:$0xff] %vm1067_vm0, %v1029_v52  ;;  %v349_v52 = vld [vmem:[%s4960_s0 + $0xa90] sm:$0xff]  ;;  %v1052_v57 = vadd.f32 %v700_v50, %v348_v49 }
 0x140   :  { %1384 = vst.msk [vmem:[%s4962_s2 + $0x9d8] sm:$0x3f] %vm1069_vm1, %v1030_v55  ;;  %v350_v55 = vld [vmem:[%s4960_s0 + $0xa98] sm:$0x3f]  ;;  %v1053_v60 = vadd.f32 %v701_v53, %v349_v52 }
 0x141   :  { %1385 = vst.msk [vmem:[%s4962_s2 + $0x9e0] sm:$0xff] %vm1067_vm0, %v1031_v58  ;;  %v351_v58 = vld [vmem:[%s4960_s0 + $0xaa0] sm:$0xff]  ;;  %v1054_v63 = vadd.f32 %v702_v56, %v350_v55 }
 0x142   :  { %1386 = vst.msk [vmem:[%s4962_s2 + $0x9e8] sm:$0x3f] %vm1069_vm1, %v1032_v61  ;;  %v352_v61 = vld [vmem:[%s4960_s0 + $0xaa8] sm:$0x3f]  ;;  %v1055_v2 = vadd.f32 %v703_v59, %v351_v58 }
 0x143   :  { %1387 = vst.msk [vmem:[%s4962_s2 + $0x9f0] sm:$0xff] %vm1067_vm0, %v1033_v0  ;;  %v353_v0 = vld [vmem:[%s4960_s0 + $0xab0] sm:$0xff]  ;;  %v1056_v5 = vadd.f32 %v704_v62, %v352_v61 }
 0x144   :  { %1388 = vst.msk [vmem:[%s4962_s2 + $0x9f8] sm:$0x3f] %vm1069_vm1, %v1034_v3  ;;  %v354_v3 = vld [vmem:[%s4960_s0 + $0xab8] sm:$0x3f]  ;;  %v1057_v8 = vadd.f32 %v705_v1, %v353_v0 }
 0x145   :  { %1389 = vst.msk [vmem:[%s4962_s2 + $0xa00] sm:$0xff] %vm1067_vm0, %v1035_v6  ;;  %v355_v6 = vld [vmem:[%s4960_s0 + $0xac0] sm:$0xff]  ;;  %v1058_v11 = vadd.f32 %v706_v4, %v354_v3 }
 0x146   :  { %1390 = vst.msk [vmem:[%s4962_s2 + $0xa08] sm:$0x3f] %vm1069_vm1, %v1036_v9  ;;  %v356_v9 = vld [vmem:[%s4960_s0 + $0xac8] sm:$0x3f]  ;;  %v1059_v14 = vadd.f32 %v707_v7, %v355_v6 }
 0x147   :  { %1391 = vst.msk [vmem:[%s4962_s2 + $0xa10] sm:$0xff] %vm1067_vm0, %v1037_v12  ;;  %v357_v12 = vld [vmem:[%s4960_s0 + $0xad0] sm:$0xff]  ;;  %v1060_v17 = vadd.f32 %v708_v10, %v356_v9 }
 0x148   :  { %1392 = vst.msk [vmem:[%s4962_s2 + $0xa18] sm:$0x3f] %vm1069_vm1, %v1038_v15  ;;  %v358_v15 = vld [vmem:[%s4960_s0 + $0xad8] sm:$0x3f]  ;;  %v1061_v20 = vadd.f32 %v709_v13, %v357_v12 }
 0x149   :  { %1393 = vst.msk [vmem:[%s4962_s2 + $0xa20] sm:$0xff] %vm1067_vm0, %v1039_v18  ;;  %v359_v18 = vld [vmem:[%s4960_s0 + $0xae0] sm:$0xff]  ;;  %v1062_v23 = vadd.f32 %v710_v16, %v358_v15 }
 0x14a   :  { %1394 = vst.msk [vmem:[%s4962_s2 + $0xa28] sm:$0x3f] %vm1069_vm1, %v1040_v21  ;;  %v360_v21 = vld [vmem:[%s4960_s0 + $0xae8] sm:$0x3f]  ;;  %v1063_v26 = vadd.f32 %v711_v19, %v359_v18 }
 0x14b   :  { %1395 = vst.msk [vmem:[%s4962_s2 + $0xa30] sm:$0xff] %vm1067_vm0, %v1041_v24  ;;  %v361_v24 = vld [vmem:[%s4960_s0 + $0xaf0] sm:$0xff]  ;;  %v1064_v29 = vadd.f32 %v712_v22, %v360_v21 }
 0x14c   :  { %1396 = vst.msk [vmem:[%s4962_s2 + $0xa38] sm:$0x3f] %vm1069_vm1, %v1042_v27  ;;  %v362_v27 = vld [vmem:[%s4960_s0 + $0xaf8] sm:$0x3f] }
 0x14d   :  { %1397 = vst.msk [vmem:[%s4962_s2 + $0xa40] sm:$0xff] %vm1067_vm0, %v1043_v30  ;;  %v1065_v30 = vadd.f32 %v713_v25, %v361_v24  ;;  %v1066_v31 = vadd.f32 %v714_v28, %v362_v27 }
 0x14e   :  { %1398 = vst.msk [vmem:[%s4962_s2 + $0xa48] sm:$0x3f] %vm1069_vm1, %v1044_v33 }
 0x14f   :  { %1399 = vst.msk [vmem:[%s4962_s2 + $0xa50] sm:$0xff] %vm1067_vm0, %v1045_v36 }
 0x150   :  { %1400 = vst.msk [vmem:[%s4962_s2 + $0xa58] sm:$0x3f] %vm1069_vm1, %v1046_v39 }
 0x151   :  { %1401 = vst.msk [vmem:[%s4962_s2 + $0xa60] sm:$0xff] %vm1067_vm0, %v1047_v42 }
 0x152   :  { %1402 = vst.msk [vmem:[%s4962_s2 + $0xa68] sm:$0x3f] %vm1069_vm1, %v1048_v45 }
 0x153   :  { %1403 = vst.msk [vmem:[%s4962_s2 + $0xa70] sm:$0xff] %vm1067_vm0, %v1049_v48 }
 0x154   :  { %1404 = vst.msk [vmem:[%s4962_s2 + $0xa78] sm:$0x3f] %vm1069_vm1, %v1050_v51 }
 0x155   :  { %1405 = vst.msk [vmem:[%s4962_s2 + $0xa80] sm:$0xff] %vm1067_vm0, %v1051_v54 }
 0x156   :  { %1406 = vst.msk [vmem:[%s4962_s2 + $0xa88] sm:$0x3f] %vm1069_vm1, %v1052_v57 }
 0x157   :  { %1407 = vst.msk [vmem:[%s4962_s2 + $0xa90] sm:$0xff] %vm1067_vm0, %v1053_v60 }
 0x158   :  { %1408 = vst.msk [vmem:[%s4962_s2 + $0xa98] sm:$0x3f] %vm1069_vm1, %v1054_v63 }
 0x159   :  { %1409 = vst.msk [vmem:[%s4962_s2 + $0xaa0] sm:$0xff] %vm1067_vm0, %v1055_v2 }
 0x15a   :  { %1410 = vst.msk [vmem:[%s4962_s2 + $0xaa8] sm:$0x3f] %vm1069_vm1, %v1056_v5 }
 0x15b   :  { %1411 = vst.msk [vmem:[%s4962_s2 + $0xab0] sm:$0xff] %vm1067_vm0, %v1057_v8 }
 0x15c   :  { %1412 = vst.msk [vmem:[%s4962_s2 + $0xab8] sm:$0x3f] %vm1069_vm1, %v1058_v11 }
 0x15d   :  { %1413 = vst.msk [vmem:[%s4962_s2 + $0xac0] sm:$0xff] %vm1067_vm0, %v1059_v14 }
 0x15e   :  { %1414 = vst.msk [vmem:[%s4962_s2 + $0xac8] sm:$0x3f] %vm1069_vm1, %v1060_v17 }
 0x15f   :  { %1415 = vst.msk [vmem:[%s4962_s2 + $0xad0] sm:$0xff] %vm1067_vm0, %v1061_v20 }
 0x160   :  { %1416 = vst.msk [vmem:[%s4962_s2 + $0xad8] sm:$0x3f] %vm1069_vm1, %v1062_v23 }
 0x161   :  { %1417 = vst.msk [vmem:[%s4962_s2 + $0xae0] sm:$0xff] %vm1067_vm0, %v1063_v26 }
 0x162   :  { %1418 = vst.msk [vmem:[%s4962_s2 + $0xae8] sm:$0x3f] %vm1069_vm1, %v1064_v29 }
 0x163   :  { %1419 = vst.msk [vmem:[%s4962_s2 + $0xaf0] sm:$0xff] %vm1067_vm0, %v1065_v30 }
 0x164   :  { %1420 = vst.msk [vmem:[%s4962_s2 + $0xaf8] sm:$0x3f] %vm1069_vm1, %v1066_v31 }

</bundles_post_ra>
